<compile_context>
chip_gen: v7x
topology: tpu7x:2x2x1
jax: 0.10.0
libtpu: 0.0.40
codegen_flags: <defaults>
</compile_context>

<pallas_src>
import functools

import jax
import jax.numpy as jnp
from jax.experimental import pallas as pl
from jax.experimental.pallas import tpu as pltpu


def _round_up(x, m):
    return ((x + m - 1) // m) * m


# ---------------------------------------------------------------------------
# Pallas kernel: full VanillaVAE.forward for one batch block
# ---------------------------------------------------------------------------
def _vae_forward_kernel(
    # per-block fused activation input [obs | action | eps]
    x_ref,
    # packed parameters (weights bf16 (in,out), biases f32 (1,out))
    w1_ref, b1_ref,        # block-diag fused [encode_obs_head | encode_action_head]
    wc_ref, bc_ref,        # encode_common
    wml_ref, bml_ref,      # fused, lane-padded [encode_mu | encode_logvar]
    wda_ref, bda_ref,      # decode_action_head
    wdc_ref, bdc_ref,      # decode_common
    wrp_ref, brp_ref,      # fused, lane-padded [decode_reconst | decode_pred1]
    wp2_ref, bp2_ref,      # decode_prediction_head_layer2
    # output: lane-dense slab [recons | pred | mu | log_var | z | zero-pad]
    out_ref,
    *, O, A, L, H0, H0P, LP, AP,
):
    def linear(x, w_ref, b_ref):
        # bf16 MXU operands, f32 accumulation, f32 bias add.
        return (jnp.dot(x.astype(jnp.bfloat16), w_ref[...],
                        preferred_element_type=jnp.float32)
                + b_ref[...])

    x = x_ref[...]                                  # (BB, O+A+L) f32
    eps = x[:, O + A:]                              # (BB, L); off the matmul chain

    # ---- encode: fused block-diagonal first layer ----
    # y1 layout: [obs_enc (H0) | zero-pad to H0P | act_enc (H0)]
    y1 = jnp.maximum(linear(x, w1_ref, b1_ref), 0.0)
    o_enc = y1[:, :H0]                              # (BB, H0)
    a_enc = y1[:, H0P:H0P + H0]                     # (BB, H0)

    common = jnp.maximum(linear(o_enc * a_enc, wc_ref, bc_ref), 0.0)   # (BB, H1)

    # fused mu|logvar head; layout [mu (L) | pad to LP | log_var (L) | pad]
    mu_lv = linear(common, wml_ref, bml_ref)
    mu = mu_lv[:, :L]
    log_var = mu_lv[:, LP:LP + L]                   # lane-aligned split

    # ---- reparameterize (f32 EUP/VPU math) ----
    std = jnp.exp(0.5 * log_var)
    z = eps * std + mu                              # (BB, L)

    # ---- decode ----
    a_dec = jnp.maximum(linear(jnp.tanh(z), wda_ref, bda_ref), 0.0)    # (BB, H1)
    tmp = jnp.maximum(linear(a_dec * o_enc, wdc_ref, bdc_ref), 0.0)    # (BB, H0)

    # fused reconst|pred1 head; layout [reconst (A) | pad to AP | pred1 (H0) | pad]
    rp = linear(tmp, wrp_ref, brp_ref)
    recons = jnp.tanh(rp[:, :A])                    # (BB, A)
    p1 = jnp.maximum(rp[:, AP:AP + H0], 0.0)        # lane-aligned split, (BB, H0)
    pred = linear(p1, wp2_ref, bp2_ref)             # (BB, O)

    # ---- single lane-dense store ----
    packed = jnp.concatenate([recons, pred, mu, log_var, z], axis=-1)
    pad = out_ref.shape[-1] - packed.shape[-1]
    if pad > 0:
        packed = jnp.concatenate(
            [packed, jnp.zeros((packed.shape[0], pad), jnp.float32)], axis=-1)
    out_ref[...] = packed


# ---------------------------------------------------------------------------
# One-time parameter packing (hoisted out of the per-call forward path)
# ---------------------------------------------------------------------------
def pack_params(params):
    """Fuse sibling heads, lane-pad split points, cast weights to bf16.

    `params` is a dict of (weight, bias) with weights laid out as (in, out)
    and biases as (1, out) (i.e. transpose of PyTorch nn.Linear.weight).
    """
    w_ea, b_ea = params["encode_action"]
    w_eo, b_eo = params["encode_obs"]
    w_ec, b_ec = params["encode_common"]
    w_mu, b_mu = params["encode_mu"]
    w_lv, b_lv = params["encode_logvar"]
    w_da, b_da = params["decode_action"]
    w_dc, b_dc = params["decode_common"]
    w_re, b_re = params["decode_reconst"]
    w_p1, b_p1 = params["decode_pred1"]
    w_p2, b_p2 = params["decode_pred2"]

    A, H0 = w_ea.shape
    O = w_eo.shape[0]
    H1 = w_ec.shape[1]
    L = w_mu.shape[1]

    H0P = _round_up(H0, 128)
    LP = _round_up(L, 128)
    AP = _round_up(A, 128)

    INK = O + A + L                     # fused input width [obs|action|eps]

    # Block-diagonal first layer over the fused input; eps rows are zero.
    W1N = H0P + H0                      # [obs_enc | pad | act_enc]
    w1 = jnp.zeros((INK, W1N), jnp.float32)
    w1 = w1.at[:O, :H0].set(w_eo)
    w1 = w1.at[O:O + A, H0P:H0P + H0].set(w_ea)
    b1 = jnp.zeros((1, W1N), jnp.float32)
    b1 = b1.at[:, :H0].set(b_eo)
    b1 = b1.at[:, H0P:H0P + H0].set(b_ea)

    # Fused mu|logvar head, mu segment padded to a lane-tile boundary.
    MLN = 2 * LP
    w_ml = jnp.zeros((H1, MLN), jnp.float32)
    w_ml = w_ml.at[:, :L].set(w_mu)
    w_ml = w_ml.at[:, LP:LP + L].set(w_lv)
    b_ml = jnp.zeros((1, MLN), jnp.float32)
    b_ml = b_ml.at[:, :L].set(b_mu)
    b_ml = b_ml.at[:, LP:LP + L].set(b_lv)

    # Fused reconst|pred1 head, reconst segment padded to a lane-tile boundary.
    RPN = AP + H0P
    w_rp = jnp.zeros((H0, RPN), jnp.float32)
    w_rp = w_rp.at[:, :A].set(w_re)
    w_rp = w_rp.at[:, AP:AP + H0].set(w_p1)
    b_rp = jnp.zeros((1, RPN), jnp.float32)
    b_rp = b_rp.at[:, :A].set(b_re)
    b_rp = b_rp.at[:, AP:AP + H0].set(b_p1)

    def w(a):
        return a.astype(jnp.bfloat16)

    def b(a):
        return a.astype(jnp.float32)

    arrays = [
        w(w1), b(b1),
        w(w_ec), b(b_ec),
        w(w_ml), b(b_ml),
        w(w_da), b(b_da),
        w(w_dc), b(b_dc),
        w(w_rp), b(b_rp),
        w(w_p2), b(b_p2),
    ]
    dims = dict(O=O, A=A, L=L, H0=H0, H1=H1, H0P=H0P, LP=LP, AP=AP,
                INK=INK, W1N=W1N, MLN=MLN, RPN=RPN)
    return {"arrays": arrays, "dims": dims}


# ---------------------------------------------------------------------------
# Helpers: per-generation VMEM cap and dimension semantics
# ---------------------------------------------------------------------------
def _vmem_cap_bytes():
    try:
        cap = int(pltpu.get_tpu_info().vmem_capacity_bytes)
    except Exception:
        cap = 64 << 20   # conservative (v7x per-TC physical VMEM)
    # ~25% headroom for compiler scratch/spill, never more than 100 MiB.
    return min(int(cap * 3 // 4), 100 << 20)


def _batch_dim_semantics(num_blocks):
    try:
        kind = jax.devices()[0].device_kind.lower()
    except Exception:
        kind = ""
    if "v7" in kind and num_blocks >= 2:
        # Only CORE_PARALLEL actually splits the grid across v7x's two TCs.
        return (pltpu.CORE_PARALLEL,)
    return ("parallel",)


# ---------------------------------------------------------------------------
# Wrapper
# ---------------------------------------------------------------------------
def vanilla_vae_forward(obs, action, eps, packed, *, block_b=2048):
    """Fused VanillaVAE forward as one pallas_call with a batch grid.

    Args:
      obs:    (B, O) float32
      action: (B, A) float32
      eps:    (B, L) float32 gaussian noise for the reparameterization trick
      packed: output of pack_params(params) (one-time weight packing)
    Returns:
      dict with recons_action, prediction_residual, input, mu, log_var, z.
    """
    d = packed["dims"]
    O, A, L, H0, H1 = d["O"], d["A"], d["L"], d["H0"], d["H1"]
    H0P, LP, AP = d["H0P"], d["LP"], d["AP"]
    INK, W1N, MLN, RPN = d["INK"], d["W1N"], d["MLN"], d["RPN"]
    param_arrays = packed["arrays"]

    B = obs.shape[0]

    # Single fused activation stream [obs | action | eps].
    x = jnp.concatenate([obs.astype(jnp.float32),
                         action.astype(jnp.float32),
                         eps.astype(jnp.float32)], axis=-1)

    # --- batch tiling: large tiles (step overhead dominated regime) ---
    n_steps = max(1, -(-B // block_b))
    per_step = -(-B // n_steps)
    BB = _round_up(per_step, 256) if per_step >= 256 else _round_up(per_step, 16)
    B_pad = n_steps * BB
    if B_pad != B:
        x = jnp.pad(x, ((0, B_pad - B), (0, 0)))

    OUT = A + O + 3 * L
    OUT_PAD = _round_up(OUT, 128)
    grid = (n_steps,)

    # --- VMEM budget derived from the chip's capacity ---
    param_bytes = sum(int(a.size) * a.dtype.itemsize for a in param_arrays)
    io_bytes = BB * (_round_up(INK, 128) + OUT_PAD) * 4 * 2          # dbl-buffered
    inter_cols = (W1N + H1 + MLN + H1 + H0 + RPN + _round_up(O, 128) + OUT_PAD)
    inter_bytes = BB * 4 * 3 * inter_cols                            # f32 + bf16 + relayout headroom
    vmem_bytes = int(min(max(2 * param_bytes + io_bytes + inter_bytes + (2 << 20),
                             16 << 20),
                         _vmem_cap_bytes()))

    flops = 2 * B_pad * (INK * W1N + H0 * H1 + H1 * MLN
                         + L * H1 + H1 * H0 + H0 * RPN + H0 * O)
    transcendentals = B_pad * (2 * L + A)
    bytes_accessed = 4 * int(x.size) + param_bytes + 4 * B_pad * OUT_PAD

    kernel = functools.partial(_vae_forward_kernel,
                               O=O, A=A, L=L, H0=H0, H0P=H0P, LP=LP, AP=AP)
    dim_sem = _batch_dim_semantics(n_steps)

    def _run(param_pipeline_mode, sem):
        def param_spec(arr):
            # Constant block index: parameter stays VMEM-resident, DMA'd once.
            if param_pipeline_mode is None:
                return pl.BlockSpec(arr.shape, lambda i: (0, 0))
            return pl.BlockSpec(arr.shape, lambda i: (0, 0),
                                pipeline_mode=param_pipeline_mode)

        in_specs = ([pl.BlockSpec((BB, INK), lambda i: (i, 0))]
                    + [param_spec(a) for a in param_arrays])
        out_spec = pl.BlockSpec((BB, OUT_PAD), lambda i: (i, 0))

        return pl.pallas_call(
            kernel,
            out_shape=jax.ShapeDtypeStruct((B_pad, OUT_PAD), jnp.float32),
            grid=grid,
            in_specs=in_specs,
            out_specs=out_spec,
            compiler_params=pltpu.CompilerParams(
                dimension_semantics=sem,
                vmem_limit_bytes=vmem_bytes,
            ),
            cost_estimate=pl.CostEstimate(
                flops=flops,
                transcendentals=transcendentals,
                bytes_accessed=bytes_accessed,
            ),
        )(x, *param_arrays)

    # Preferred config first; fall back to double-buffered params / plain
    # "parallel" semantics if this jax/TPU combination rejects them.
    configs = []
    if hasattr(pl, "Buffered"):
        configs.append((pl.Buffered(1), dim_sem))
    configs.append((None, dim_sem))
    if dim_sem != ("parallel",):
        configs.append((None, ("parallel",)))

    out = None
    last_err = None
    for mode, sem in configs:
        try:
            out = _run(mode, sem)
            break
        except Exception as e:       # pragma: no cover - fallback path
            last_err = e
    if out is None:
        raise last_err

    recons = out[:B, 0:A]
    pred = out[:B, A:A + O]
    mu = out[:B, A + O:A + O + L]
    log_var = out[:B, A + O + L:A + O + 2 * L]
    z = out[:B, A + O + 2 * L:A + O + 3 * L]

    return {
        "recons_action": recons,
        "prediction_residual": pred,
        "input": {"obs": obs, "action": action},
        "mu": mu,
        "log_var": log_var,
        "z": z,
    }


# ---------------------------------------------------------------------------
# Deterministic parameter construction (shapes from VanillaVAE.__init__)
# ---------------------------------------------------------------------------
def init_params(key, action_shape, obs_shape, latent_size, hidden_dims):
    H0, H1 = hidden_dims[0], hidden_dims[1]
    layer_dims = {
        "encode_action": (action_shape, H0),
        "encode_obs": (obs_shape, H0),
        "encode_common": (H0, H1),
        "encode_mu": (H1, latent_size),
        "encode_logvar": (H1, latent_size),
        "decode_action": (latent_size, H1),
        "decode_common": (H1, H0),
        "decode_reconst": (H0, action_shape),
        "decode_pred1": (H0, H0),
        "decode_pred2": (H0, obs_shape),
    }
    params = {}
    for name, (din, dout) in layer_dims.items():
        key, kw, kb = jax.random.split(key, 3)
        bound = 1.0 / jnp.sqrt(din)  # matches nn.Linear default init range
        w = jax.random.uniform(kw, (din, dout), jnp.float32, -bound, bound)
        b = jax.random.uniform(kb, (1, dout), jnp.float32, -bound, bound)
        params[name] = (w, b)
    return params


# Pure-JAX reference on the ORIGINAL (unfused) params, using the same
# bf16-matmul / f32-accumulate numerics as the kernel.
# NOTE: this intentionally matches the kernel's bf16 MXU precision; a pure-f32
# PyTorch VanillaVAE will differ by normal bf16 rounding.
def _reference_forward(obs, action, eps, params):
    def lin(x, p):
        w, b = p
        return jnp.dot(x.astype(jnp.bfloat16), w.astype(jnp.bfloat16),
                       preferred_element_type=jnp.float32) + b

    a_enc = jax.nn.relu(lin(action, params["encode_action"]))
    o_enc = jax.nn.relu(lin(obs, params["encode_obs"]))
    h = o_enc * a_enc
    c = jax.nn.relu(lin(h, params["encode_common"]))
    mu = lin(c, params["encode_mu"])
    lv = lin(c, params["encode_logvar"])
    z = eps * jnp.exp(0.5 * lv) + mu
    a_dec = jax.nn.relu(lin(jnp.tanh(z), params["decode_action"]))
    ao = a_dec * o_enc
    tmp = jax.nn.relu(lin(ao, params["decode_common"]))
    recons = jnp.tanh(lin(tmp, params["decode_reconst"]))
    p1 = jax.nn.relu(lin(tmp, params["decode_pred1"]))
    pred = lin(p1, params["decode_pred2"])
    return recons, pred, mu, lv, z


if __name__ == "__main__":
    # Small shapes consistent with the module's forward.
    B, A, O, L = 2, 6, 8, 4
    hidden_dims = [32, 32]

    key = jax.random.PRNGKey(0)
    k_obs, k_act, k_eps, k_par = jax.random.split(key, 4)

    obs = jax.random.normal(k_obs, (B, O), jnp.float32)
    action = jax.random.normal(k_act, (B, A), jnp.float32)
    eps = jax.random.normal(k_eps, (B, L), jnp.float32)   # torch.randn_like(std)
    params = init_params(k_par, A, O, L, hidden_dims)

    packed = pack_params(params)                 # one-time weight packing
    out = vanilla_vae_forward(obs, action, eps, packed)
    jax.block_until_ready(out)

    # Sanity check vs pure-JAX reference (bf16 matmuls => looser tolerance).
    ref = _reference_forward(obs, action, eps, params)
    for got, exp in zip(
        (out["recons_action"], out["prediction_residual"], out["mu"],
         out["log_var"], out["z"]),
        ref,
    ):
        assert got.shape == exp.shape, "shape mismatch vs reference"
        assert jnp.allclose(got, exp, atol=1e-2, rtol=1e-2), "mismatch vs reference"

    print("KERNEL_OK")
</pallas_src>

<mosaic_0001>
module attributes {stable_mosaic.version = 11 : i64} {
  func.func @_vae_forward_kernel(%arg0: i32, %arg1: memref<16x18xf32, #tpu.memory_space<vmem>>, %arg2: memref<18x160xbf16, #tpu.memory_space<vmem>>, %arg3: memref<1x160xf32, #tpu.memory_space<vmem>>, %arg4: memref<32x32xbf16, #tpu.memory_space<vmem>>, %arg5: memref<1x32xf32, #tpu.memory_space<vmem>>, %arg6: memref<32x256xbf16, #tpu.memory_space<vmem>>, %arg7: memref<1x256xf32, #tpu.memory_space<vmem>>, %arg8: memref<4x32xbf16, #tpu.memory_space<vmem>>, %arg9: memref<1x32xf32, #tpu.memory_space<vmem>>, %arg10: memref<32x32xbf16, #tpu.memory_space<vmem>>, %arg11: memref<1x32xf32, #tpu.memory_space<vmem>>, %arg12: memref<32x256xbf16, #tpu.memory_space<vmem>>, %arg13: memref<1x256xf32, #tpu.memory_space<vmem>>, %arg14: memref<32x8xbf16, #tpu.memory_space<vmem>>, %arg15: memref<1x8xf32, #tpu.memory_space<vmem>>, %arg16: memref<16x128xf32, #tpu.memory_space<vmem>>) attributes {dimension_semantics = [#tpu.dimension_semantics<parallel>], iteration_bounds = array<i64: 1>, scalar_prefetch = 0 : i64, scratch_operands = 0 : i64, tpu.core_type = #tpu.core_type<tc>, window_params = [{transform_indices = @transform_0, window_bounds = array<i64: 16, 18>}, {pipeline_mode = #tpu.pipeline_mode<synchronous>, transform_indices = @transform_1, window_bounds = array<i64: 18, 160>}, {pipeline_mode = #tpu.pipeline_mode<synchronous>, transform_indices = @transform_2, window_bounds = array<i64: 1, 160>}, {pipeline_mode = #tpu.pipeline_mode<synchronous>, transform_indices = @transform_3, window_bounds = array<i64: 32, 32>}, {pipeline_mode = #tpu.pipeline_mode<synchronous>, transform_indices = @transform_4, window_bounds = array<i64: 1, 32>}, {pipeline_mode = #tpu.pipeline_mode<synchronous>, transform_indices = @transform_5, window_bounds = array<i64: 32, 256>}, {pipeline_mode = #tpu.pipeline_mode<synchronous>, transform_indices = @transform_6, window_bounds = array<i64: 1, 256>}, {pipeline_mode = #tpu.pipeline_mode<synchronous>, transform_indices = @transform_7, window_bounds = array<i64: 4, 32>}, {pipeline_mode = #tpu.pipeline_mode<synchronous>, transform_indices = @transform_8, window_bounds = array<i64: 1, 32>}, {pipeline_mode = #tpu.pipeline_mode<synchronous>, transform_indices = @transform_9, window_bounds = array<i64: 32, 32>}, {pipeline_mode = #tpu.pipeline_mode<synchronous>, transform_indices = @transform_10, window_bounds = array<i64: 1, 32>}, {pipeline_mode = #tpu.pipeline_mode<synchronous>, transform_indices = @transform_11, window_bounds = array<i64: 32, 256>}, {pipeline_mode = #tpu.pipeline_mode<synchronous>, transform_indices = @transform_12, window_bounds = array<i64: 1, 256>}, {pipeline_mode = #tpu.pipeline_mode<synchronous>, transform_indices = @transform_13, window_bounds = array<i64: 32, 8>}, {pipeline_mode = #tpu.pipeline_mode<synchronous>, transform_indices = @transform_14, window_bounds = array<i64: 1, 8>}, {transform_indices = @transform_15, window_bounds = array<i64: 16, 128>}]} {
    %c0 = arith.constant 0 : index
    %c0_0 = arith.constant 0 : index
    %0 = vector.load %arg1[%c0, %c0_0] : memref<16x18xf32, #tpu.memory_space<vmem>>, vector<16x18xf32>
    %1 = vector.extract_strided_slice %0 {offsets = [0, 14], sizes = [16, 4], strides = [1, 1]} : vector<16x18xf32> to vector<16x4xf32>
    %2 = arith.truncf %0 : vector<16x18xf32> to vector<16x18xbf16>
    %c0_1 = arith.constant 0 : index
    %c0_2 = arith.constant 0 : index
    %3 = vector.load %arg2[%c0_1, %c0_2] : memref<18x160xbf16, #tpu.memory_space<vmem>>, vector<18x160xbf16>
    %cst = arith.constant dense<0.000000e+00> : vector<16x160xf32>
    %4 = tpu.matmul %2, %3, %cst {dimension_numbers = #tpu.dot_dimension_numbers<[1], [0], [0], [1], [0, 0, 1, 1], [], []>} : vector<16x18xbf16>, vector<18x160xbf16>, vector<16x160xf32> -> vector<16x160xf32>
    %c0_3 = arith.constant 0 : index
    %c0_4 = arith.constant 0 : index
    %5 = vector.load %arg3[%c0_3, %c0_4] : memref<1x160xf32, #tpu.memory_space<vmem>>, vector<1x160xf32>
    %6 = vector.broadcast %5 : vector<1x160xf32> to vector<16x160xf32>
    %7 = arith.addf %4, %6 : vector<16x160xf32>
    %cst_5 = arith.constant 0.000000e+00 : f32
    %8 = vector.broadcast %cst_5 : f32 to vector<16x160xf32>
    %9 = arith.maximumf %7, %8 : vector<16x160xf32>
    %10 = vector.extract_strided_slice %9 {offsets = [0, 0], sizes = [16, 32], strides = [1, 1]} : vector<16x160xf32> to vector<16x32xf32>
    %11 = vector.extract_strided_slice %9 {offsets = [0, 128], sizes = [16, 32], strides = [1, 1]} : vector<16x160xf32> to vector<16x32xf32>
    %12 = arith.mulf %10, %11 : vector<16x32xf32>
    %13 = arith.truncf %12 : vector<16x32xf32> to vector<16x32xbf16>
    %c0_6 = arith.constant 0 : index
    %c0_7 = arith.constant 0 : index
    %14 = vector.load %arg4[%c0_6, %c0_7] : memref<32x32xbf16, #tpu.memory_space<vmem>>, vector<32x32xbf16>
    %cst_8 = arith.constant dense<0.000000e+00> : vector<16x32xf32>
    %15 = tpu.matmul %13, %14, %cst_8 {dimension_numbers = #tpu.dot_dimension_numbers<[1], [0], [0], [1], [0, 0, 1, 1], [], []>} : vector<16x32xbf16>, vector<32x32xbf16>, vector<16x32xf32> -> vector<16x32xf32>
    %c0_9 = arith.constant 0 : index
    %c0_10 = arith.constant 0 : index
    %16 = vector.load %arg5[%c0_9, %c0_10] : memref<1x32xf32, #tpu.memory_space<vmem>>, vector<1x32xf32>
    %17 = vector.broadcast %16 : vector<1x32xf32> to vector<16x32xf32>
    %18 = arith.addf %15, %17 : vector<16x32xf32>
    %cst_11 = arith.constant 0.000000e+00 : f32
    %19 = vector.broadcast %cst_11 : f32 to vector<16x32xf32>
    %20 = arith.maximumf %18, %19 : vector<16x32xf32>
    %21 = arith.truncf %20 : vector<16x32xf32> to vector<16x32xbf16>
    %c0_12 = arith.constant 0 : index
    %c0_13 = arith.constant 0 : index
    %22 = vector.load %arg6[%c0_12, %c0_13] : memref<32x256xbf16, #tpu.memory_space<vmem>>, vector<32x256xbf16>
    %cst_14 = arith.constant dense<0.000000e+00> : vector<16x256xf32>
    %23 = tpu.matmul %21, %22, %cst_14 {dimension_numbers = #tpu.dot_dimension_numbers<[1], [0], [0], [1], [0, 0, 1, 1], [], []>} : vector<16x32xbf16>, vector<32x256xbf16>, vector<16x256xf32> -> vector<16x256xf32>
    %c0_15 = arith.constant 0 : index
    %c0_16 = arith.constant 0 : index
    %24 = vector.load %arg7[%c0_15, %c0_16] : memref<1x256xf32, #tpu.memory_space<vmem>>, vector<1x256xf32>
    %25 = vector.broadcast %24 : vector<1x256xf32> to vector<16x256xf32>
    %26 = arith.addf %23, %25 : vector<16x256xf32>
    %27 = vector.extract_strided_slice %26 {offsets = [0, 0], sizes = [16, 4], strides = [1, 1]} : vector<16x256xf32> to vector<16x4xf32>
    %28 = vector.extract_strided_slice %26 {offsets = [0, 128], sizes = [16, 4], strides = [1, 1]} : vector<16x256xf32> to vector<16x4xf32>
    %cst_17 = arith.constant 5.000000e-01 : f32
    %29 = vector.broadcast %cst_17 : f32 to vector<16x4xf32>
    %30 = arith.mulf %29, %28 : vector<16x4xf32>
    %31 = math.exp %30 : vector<16x4xf32>
    %32 = arith.mulf %1, %31 : vector<16x4xf32>
    %33 = arith.addf %32, %27 : vector<16x4xf32>
    %34 = math.tanh %33 : vector<16x4xf32>
    %35 = arith.truncf %34 : vector<16x4xf32> to vector<16x4xbf16>
    %c0_18 = arith.constant 0 : index
    %c0_19 = arith.constant 0 : index
    %36 = vector.load %arg8[%c0_18, %c0_19] : memref<4x32xbf16, #tpu.memory_space<vmem>>, vector<4x32xbf16>
    %cst_20 = arith.constant dense<0.000000e+00> : vector<16x32xf32>
    %37 = tpu.matmul %35, %36, %cst_20 {dimension_numbers = #tpu.dot_dimension_numbers<[1], [0], [0], [1], [0, 0, 1, 1], [], []>} : vector<16x4xbf16>, vector<4x32xbf16>, vector<16x32xf32> -> vector<16x32xf32>
    %c0_21 = arith.constant 0 : index
    %c0_22 = arith.constant 0 : index
    %38 = vector.load %arg9[%c0_21, %c0_22] : memref<1x32xf32, #tpu.memory_space<vmem>>, vector<1x32xf32>
    %39 = vector.broadcast %38 : vector<1x32xf32> to vector<16x32xf32>
    %40 = arith.addf %37, %39 : vector<16x32xf32>
    %cst_23 = arith.constant 0.000000e+00 : f32
    %41 = vector.broadcast %cst_23 : f32 to vector<16x32xf32>
    %42 = arith.maximumf %40, %41 : vector<16x32xf32>
    %43 = arith.mulf %42, %10 : vector<16x32xf32>
    %44 = arith.truncf %43 : vector<16x32xf32> to vector<16x32xbf16>
    %c0_24 = arith.constant 0 : index
    %c0_25 = arith.constant 0 : index
    %45 = vector.load %arg10[%c0_24, %c0_25] : memref<32x32xbf16, #tpu.memory_space<vmem>>, vector<32x32xbf16>
    %cst_26 = arith.constant dense<0.000000e+00> : vector<16x32xf32>
    %46 = tpu.matmul %44, %45, %cst_26 {dimension_numbers = #tpu.dot_dimension_numbers<[1], [0], [0], [1], [0, 0, 1, 1], [], []>} : vector<16x32xbf16>, vector<32x32xbf16>, vector<16x32xf32> -> vector<16x32xf32>
    %c0_27 = arith.constant 0 : index
    %c0_28 = arith.constant 0 : index
    %47 = vector.load %arg11[%c0_27, %c0_28] : memref<1x32xf32, #tpu.memory_space<vmem>>, vector<1x32xf32>
    %48 = vector.broadcast %47 : vector<1x32xf32> to vector<16x32xf32>
    %49 = arith.addf %46, %48 : vector<16x32xf32>
    %cst_29 = arith.constant 0.000000e+00 : f32
    %50 = vector.broadcast %cst_29 : f32 to vector<16x32xf32>
    %51 = arith.maximumf %49, %50 : vector<16x32xf32>
    %52 = arith.truncf %51 : vector<16x32xf32> to vector<16x32xbf16>
    %c0_30 = arith.constant 0 : index
    %c0_31 = arith.constant 0 : index
    %53 = vector.load %arg12[%c0_30, %c0_31] : memref<32x256xbf16, #tpu.memory_space<vmem>>, vector<32x256xbf16>
    %cst_32 = arith.constant dense<0.000000e+00> : vector<16x256xf32>
    %54 = tpu.matmul %52, %53, %cst_32 {dimension_numbers = #tpu.dot_dimension_numbers<[1], [0], [0], [1], [0, 0, 1, 1], [], []>} : vector<16x32xbf16>, vector<32x256xbf16>, vector<16x256xf32> -> vector<16x256xf32>
    %c0_33 = arith.constant 0 : index
    %c0_34 = arith.constant 0 : index
    %55 = vector.load %arg13[%c0_33, %c0_34] : memref<1x256xf32, #tpu.memory_space<vmem>>, vector<1x256xf32>
    %56 = vector.broadcast %55 : vector<1x256xf32> to vector<16x256xf32>
    %57 = arith.addf %54, %56 : vector<16x256xf32>
    %58 = vector.extract_strided_slice %57 {offsets = [0, 0], sizes = [16, 6], strides = [1, 1]} : vector<16x256xf32> to vector<16x6xf32>
    %59 = math.tanh %58 : vector<16x6xf32>
    %60 = vector.extract_strided_slice %57 {offsets = [0, 128], sizes = [16, 32], strides = [1, 1]} : vector<16x256xf32> to vector<16x32xf32>
    %cst_35 = arith.constant 0.000000e+00 : f32
    %61 = vector.broadcast %cst_35 : f32 to vector<16x32xf32>
    %62 = arith.maximumf %60, %61 : vector<16x32xf32>
    %63 = arith.truncf %62 : vector<16x32xf32> to vector<16x32xbf16>
    %c0_36 = arith.constant 0 : index
    %c0_37 = arith.constant 0 : index
    %64 = vector.load %arg14[%c0_36, %c0_37] : memref<32x8xbf16, #tpu.memory_space<vmem>>, vector<32x8xbf16>
    %cst_38 = arith.constant dense<0.000000e+00> : vector<16x8xf32>
    %65 = tpu.matmul %63, %64, %cst_38 {dimension_numbers = #tpu.dot_dimension_numbers<[1], [0], [0], [1], [0, 0, 1, 1], [], []>} : vector<16x32xbf16>, vector<32x8xbf16>, vector<16x8xf32> -> vector<16x8xf32>
    %c0_39 = arith.constant 0 : index
    %c0_40 = arith.constant 0 : index
    %66 = vector.load %arg15[%c0_39, %c0_40] : memref<1x8xf32, #tpu.memory_space<vmem>>, vector<1x8xf32>
    %67 = vector.broadcast %66 : vector<1x8xf32> to vector<16x8xf32>
    %68 = arith.addf %65, %67 : vector<16x8xf32>
    %69 = tpu.concatenate %59, %68, %27, %28, %33 in 1 : vector<16x6xf32>, vector<16x8xf32>, vector<16x4xf32>, vector<16x4xf32>, vector<16x4xf32> -> vector<16x26xf32>
    %cst_41 = arith.constant 0.000000e+00 : f32
    %70 = vector.broadcast %cst_41 : f32 to vector<16x102xf32>
    %71 = tpu.concatenate %69, %70 in 1 : vector<16x26xf32>, vector<16x102xf32> -> vector<16x128xf32>
    %c0_42 = arith.constant 0 : index
    %c0_43 = arith.constant 0 : index
    %72 = vector.load %arg16[%c0_42, %c0_43] : memref<16x128xf32, #tpu.memory_space<vmem>>, vector<16x128xf32>
    tpu.vector_store %arg16[%c0_42, %c0_43], %71 {strides = array<i32>} : memref<16x128xf32, #tpu.memory_space<vmem>>, vector<16x128xf32>,
    return
  }
  func.func @transform_0(%arg0: i32) -> (i32, i32) {
    %c0_i32 = arith.constant 0 : i32
    %c0_i32_0 = arith.constant 0 : i32
    return %arg0, %c0_i32 : i32, i32
  }
  func.func @transform_1(%arg0: i32) -> (i32, i32) {
    %c0_i32 = arith.constant 0 : i32
    %c0_i32_0 = arith.constant 0 : i32
    %c0_i32_1 = arith.constant 0 : i32
    return %c0_i32, %c0_i32_0 : i32, i32
  }
  func.func @transform_2(%arg0: i32) -> (i32, i32) {
    %c0_i32 = arith.constant 0 : i32
    %c0_i32_0 = arith.constant 0 : i32
    %c0_i32_1 = arith.constant 0 : i32
    return %c0_i32, %c0_i32_0 : i32, i32
  }
  func.func @transform_3(%arg0: i32) -> (i32, i32) {
    %c0_i32 = arith.constant 0 : i32
    %c0_i32_0 = arith.constant 0 : i32
    %c0_i32_1 = arith.constant 0 : i32
    return %c0_i32, %c0_i32_0 : i32, i32
  }
  func.func @transform_4(%arg0: i32) -> (i32, i32) {
    %c0_i32 = arith.constant 0 : i32
    %c0_i32_0 = arith.constant 0 : i32
    %c0_i32_1 = arith.constant 0 : i32
    return %c0_i32, %c0_i32_0 : i32, i32
  }
  func.func @transform_5(%arg0: i32) -> (i32, i32) {
    %c0_i32 = arith.constant 0 : i32
    %c0_i32_0 = arith.constant 0 : i32
    %c0_i32_1 = arith.constant 0 : i32
    return %c0_i32, %c0_i32_0 : i32, i32
  }
  func.func @transform_6(%arg0: i32) -> (i32, i32) {
    %c0_i32 = arith.constant 0 : i32
    %c0_i32_0 = arith.constant 0 : i32
    %c0_i32_1 = arith.constant 0 : i32
    return %c0_i32, %c0_i32_0 : i32, i32
  }
  func.func @transform_7(%arg0: i32) -> (i32, i32) {
    %c0_i32 = arith.constant 0 : i32
    %c0_i32_0 = arith.constant 0 : i32
    %c0_i32_1 = arith.constant 0 : i32
    return %c0_i32, %c0_i32_0 : i32, i32
  }
  func.func @transform_8(%arg0: i32) -> (i32, i32) {
    %c0_i32 = arith.constant 0 : i32
    %c0_i32_0 = arith.constant 0 : i32
    %c0_i32_1 = arith.constant 0 : i32
    return %c0_i32, %c0_i32_0 : i32, i32
  }
  func.func @transform_9(%arg0: i32) -> (i32, i32) {
    %c0_i32 = arith.constant 0 : i32
    %c0_i32_0 = arith.constant 0 : i32
    %c0_i32_1 = arith.constant 0 : i32
    return %c0_i32, %c0_i32_0 : i32, i32
  }
  func.func @transform_10(%arg0: i32) -> (i32, i32) {
    %c0_i32 = arith.constant 0 : i32
    %c0_i32_0 = arith.constant 0 : i32
    %c0_i32_1 = arith.constant 0 : i32
    return %c0_i32, %c0_i32_0 : i32, i32
  }
  func.func @transform_11(%arg0: i32) -> (i32, i32) {
    %c0_i32 = arith.constant 0 : i32
    %c0_i32_0 = arith.constant 0 : i32
    %c0_i32_1 = arith.constant 0 : i32
    return %c0_i32, %c0_i32_0 : i32, i32
  }
  func.func @transform_12(%arg0: i32) -> (i32, i32) {
    %c0_i32 = arith.constant 0 : i32
    %c0_i32_0 = arith.constant 0 : i32
    %c0_i32_1 = arith.constant 0 : i32
    return %c0_i32, %c0_i32_0 : i32, i32
  }
  func.func @transform_13(%arg0: i32) -> (i32, i32) {
    %c0_i32 = arith.constant 0 : i32
    %c0_i32_0 = arith.constant 0 : i32
    %c0_i32_1 = arith.constant 0 : i32
    return %c0_i32, %c0_i32_0 : i32, i32
  }
  func.func @transform_14(%arg0: i32) -> (i32, i32) {
    %c0_i32 = arith.constant 0 : i32
    %c0_i32_0 = arith.constant 0 : i32
    %c0_i32_1 = arith.constant 0 : i32
    return %c0_i32, %c0_i32_0 : i32, i32
  }
  func.func @transform_15(%arg0: i32) -> (i32, i32) {
    %c0_i32 = arith.constant 0 : i32
    %c0_i32_0 = arith.constant 0 : i32
    return %arg0, %c0_i32 : i32, i32
  }
}

module attributes {stable_mosaic.version = 11 : i64} {
  func.func @_vae_forward_kernel(%arg0: i32, %arg1: memref<16x18xf32, #tpu.memory_space<vmem>>, %arg2: memref<18x160xbf16, #tpu.memory_space<vmem>>, %arg3: memref<1x160xf32, #tpu.memory_space<vmem>>, %arg4: memref<32x32xbf16, #tpu.memory_space<vmem>>, %arg5: memref<1x32xf32, #tpu.memory_space<vmem>>, %arg6: memref<32x256xbf16, #tpu.memory_space<vmem>>, %arg7: memref<1x256xf32, #tpu.memory_space<vmem>>, %arg8: memref<4x32xbf16, #tpu.memory_space<vmem>>, %arg9: memref<1x32xf32, #tpu.memory_space<vmem>>, %arg10: memref<32x32xbf16, #tpu.memory_space<vmem>>, %arg11: memref<1x32xf32, #tpu.memory_space<vmem>>, %arg12: memref<32x256xbf16, #tpu.memory_space<vmem>>, %arg13: memref<1x256xf32, #tpu.memory_space<vmem>>, %arg14: memref<32x8xbf16, #tpu.memory_space<vmem>>, %arg15: memref<1x8xf32, #tpu.memory_space<vmem>>, %arg16: memref<16x128xf32, #tpu.memory_space<vmem>>) attributes {dimension_semantics = [#tpu.dimension_semantics<parallel>], iteration_bounds = array<i64: 1>, scalar_prefetch = 0 : i64, scratch_operands = 0 : i64, tpu.core_type = #tpu.core_type<tc>, window_params = [{transform_indices = @transform_0, window_bounds = array<i64: 16, 18>}, {pipeline_mode = #tpu.pipeline_mode<synchronous>, transform_indices = @transform_1, window_bounds = array<i64: 18, 160>}, {pipeline_mode = #tpu.pipeline_mode<synchronous>, transform_indices = @transform_2, window_bounds = array<i64: 1, 160>}, {pipeline_mode = #tpu.pipeline_mode<synchronous>, transform_indices = @transform_3, window_bounds = array<i64: 32, 32>}, {pipeline_mode = #tpu.pipeline_mode<synchronous>, transform_indices = @transform_4, window_bounds = array<i64: 1, 32>}, {pipeline_mode = #tpu.pipeline_mode<synchronous>, transform_indices = @transform_5, window_bounds = array<i64: 32, 256>}, {pipeline_mode = #tpu.pipeline_mode<synchronous>, transform_indices = @transform_6, window_bounds = array<i64: 1, 256>}, {pipeline_mode = #tpu.pipeline_mode<synchronous>, transform_indices = @transform_7, window_bounds = array<i64: 4, 32>}, {pipeline_mode = #tpu.pipeline_mode<synchronous>, transform_indices = @transform_8, window_bounds = array<i64: 1, 32>}, {pipeline_mode = #tpu.pipeline_mode<synchronous>, transform_indices = @transform_9, window_bounds = array<i64: 32, 32>}, {pipeline_mode = #tpu.pipeline_mode<synchronous>, transform_indices = @transform_10, window_bounds = array<i64: 1, 32>}, {pipeline_mode = #tpu.pipeline_mode<synchronous>, transform_indices = @transform_11, window_bounds = array<i64: 32, 256>}, {pipeline_mode = #tpu.pipeline_mode<synchronous>, transform_indices = @transform_12, window_bounds = array<i64: 1, 256>}, {pipeline_mode = #tpu.pipeline_mode<synchronous>, transform_indices = @transform_13, window_bounds = array<i64: 32, 8>}, {pipeline_mode = #tpu.pipeline_mode<synchronous>, transform_indices = @transform_14, window_bounds = array<i64: 1, 8>}, {transform_indices = @transform_15, window_bounds = array<i64: 16, 128>}]} {
    %c0 = arith.constant 0 : index
    %c0_0 = arith.constant 0 : index
    %0 = vector.load %arg1[%c0, %c0_0] : memref<16x18xf32, #tpu.memory_space<vmem>>, vector<16x18xf32>
    %1 = vector.extract_strided_slice %0 {offsets = [0, 14], sizes = [16, 4], strides = [1, 1]} : vector<16x18xf32> to vector<16x4xf32>
    %2 = arith.truncf %0 : vector<16x18xf32> to vector<16x18xbf16>
    %c0_1 = arith.constant 0 : index
    %c0_2 = arith.constant 0 : index
    %3 = vector.load %arg2[%c0_1, %c0_2] : memref<18x160xbf16, #tpu.memory_space<vmem>>, vector<18x160xbf16>
    %cst = arith.constant dense<0.000000e+00> : vector<16x160xf32>
    %4 = tpu.matmul %2, %3, %cst {dimension_numbers = #tpu.dot_dimension_numbers<[1], [0], [0], [1], [0, 0, 1, 1], [], []>} : vector<16x18xbf16>, vector<18x160xbf16>, vector<16x160xf32> -> vector<16x160xf32>
    %c0_3 = arith.constant 0 : index
    %c0_4 = arith.constant 0 : index
    %5 = vector.load %arg3[%c0_3, %c0_4] : memref<1x160xf32, #tpu.memory_space<vmem>>, vector<1x160xf32>
    %6 = vector.broadcast %5 : vector<1x160xf32> to vector<16x160xf32>
    %7 = arith.addf %4, %6 : vector<16x160xf32>
    %cst_5 = arith.constant 0.000000e+00 : f32
    %8 = vector.broadcast %cst_5 : f32 to vector<16x160xf32>
    %9 = arith.maximumf %7, %8 : vector<16x160xf32>
    %10 = vector.extract_strided_slice %9 {offsets = [0, 0], sizes = [16, 32], strides = [1, 1]} : vector<16x160xf32> to vector<16x32xf32>
    %11 = vector.extract_strided_slice %9 {offsets = [0, 128], sizes = [16, 32], strides = [1, 1]} : vector<16x160xf32> to vector<16x32xf32>
    %12 = arith.mulf %10, %11 : vector<16x32xf32>
    %13 = arith.truncf %12 : vector<16x32xf32> to vector<16x32xbf16>
    %c0_6 = arith.constant 0 : index
    %c0_7 = arith.constant 0 : index
    %14 = vector.load %arg4[%c0_6, %c0_7] : memref<32x32xbf16, #tpu.memory_space<vmem>>, vector<32x32xbf16>
    %cst_8 = arith.constant dense<0.000000e+00> : vector<16x32xf32>
    %15 = tpu.matmul %13, %14, %cst_8 {dimension_numbers = #tpu.dot_dimension_numbers<[1], [0], [0], [1], [0, 0, 1, 1], [], []>} : vector<16x32xbf16>, vector<32x32xbf16>, vector<16x32xf32> -> vector<16x32xf32>
    %c0_9 = arith.constant 0 : index
    %c0_10 = arith.constant 0 : index
    %16 = vector.load %arg5[%c0_9, %c0_10] : memref<1x32xf32, #tpu.memory_space<vmem>>, vector<1x32xf32>
    %17 = vector.broadcast %16 : vector<1x32xf32> to vector<16x32xf32>
    %18 = arith.addf %15, %17 : vector<16x32xf32>
    %cst_11 = arith.constant 0.000000e+00 : f32
    %19 = vector.broadcast %cst_11 : f32 to vector<16x32xf32>
    %20 = arith.maximumf %18, %19 : vector<16x32xf32>
    %21 = arith.truncf %20 : vector<16x32xf32> to vector<16x32xbf16>
    %c0_12 = arith.constant 0 : index
    %c0_13 = arith.constant 0 : index
    %22 = vector.load %arg6[%c0_12, %c0_13] : memref<32x256xbf16, #tpu.memory_space<vmem>>, vector<32x256xbf16>
    %cst_14 = arith.constant dense<0.000000e+00> : vector<16x256xf32>
    %23 = tpu.matmul %21, %22, %cst_14 {dimension_numbers = #tpu.dot_dimension_numbers<[1], [0], [0], [1], [0, 0, 1, 1], [], []>} : vector<16x32xbf16>, vector<32x256xbf16>, vector<16x256xf32> -> vector<16x256xf32>
    %c0_15 = arith.constant 0 : index
    %c0_16 = arith.constant 0 : index
    %24 = vector.load %arg7[%c0_15, %c0_16] : memref<1x256xf32, #tpu.memory_space<vmem>>, vector<1x256xf32>
    %25 = vector.broadcast %24 : vector<1x256xf32> to vector<16x256xf32>
    %26 = arith.addf %23, %25 : vector<16x256xf32>
    %27 = vector.extract_strided_slice %26 {offsets = [0, 0], sizes = [16, 4], strides = [1, 1]} : vector<16x256xf32> to vector<16x4xf32>
    %28 = vector.extract_strided_slice %26 {offsets = [0, 128], sizes = [16, 4], strides = [1, 1]} : vector<16x256xf32> to vector<16x4xf32>
    %cst_17 = arith.constant 5.000000e-01 : f32
    %29 = vector.broadcast %cst_17 : f32 to vector<16x4xf32>
    %30 = arith.mulf %29, %28 : vector<16x4xf32>
    %31 = math.exp %30 : vector<16x4xf32>
    %32 = arith.mulf %1, %31 : vector<16x4xf32>
    %33 = arith.addf %32, %27 : vector<16x4xf32>
    %34 = math.tanh %33 : vector<16x4xf32>
    %35 = arith.truncf %34 : vector<16x4xf32> to vector<16x4xbf16>
    %c0_18 = arith.constant 0 : index
    %c0_19 = arith.constant 0 : index
    %36 = vector.load %arg8[%c0_18, %c0_19] : memref<4x32xbf16, #tpu.memory_space<vmem>>, vector<4x32xbf16>
    %cst_20 = arith.constant dense<0.000000e+00> : vector<16x32xf32>
    %37 = tpu.matmul %35, %36, %cst_20 {dimension_numbers = #tpu.dot_dimension_numbers<[1], [0], [0], [1], [0, 0, 1, 1], [], []>} : vector<16x4xbf16>, vector<4x32xbf16>, vector<16x32xf32> -> vector<16x32xf32>
    %c0_21 = arith.constant 0 : index
    %c0_22 = arith.constant 0 : index
    %38 = vector.load %arg9[%c0_21, %c0_22] : memref<1x32xf32, #tpu.memory_space<vmem>>, vector<1x32xf32>
    %39 = vector.broadcast %38 : vector<1x32xf32> to vector<16x32xf32>
    %40 = arith.addf %37, %39 : vector<16x32xf32>
    %cst_23 = arith.constant 0.000000e+00 : f32
    %41 = vector.broadcast %cst_23 : f32 to vector<16x32xf32>
    %42 = arith.maximumf %40, %41 : vector<16x32xf32>
    %43 = arith.mulf %42, %10 : vector<16x32xf32>
    %44 = arith.truncf %43 : vector<16x32xf32> to vector<16x32xbf16>
    %c0_24 = arith.constant 0 : index
    %c0_25 = arith.constant 0 : index
    %45 = vector.load %arg10[%c0_24, %c0_25] : memref<32x32xbf16, #tpu.memory_space<vmem>>, vector<32x32xbf16>
    %cst_26 = arith.constant dense<0.000000e+00> : vector<16x32xf32>
    %46 = tpu.matmul %44, %45, %cst_26 {dimension_numbers = #tpu.dot_dimension_numbers<[1], [0], [0], [1], [0, 0, 1, 1], [], []>} : vector<16x32xbf16>, vector<32x32xbf16>, vector<16x32xf32> -> vector<16x32xf32>
    %c0_27 = arith.constant 0 : index
    %c0_28 = arith.constant 0 : index
    %47 = vector.load %arg11[%c0_27, %c0_28] : memref<1x32xf32, #tpu.memory_space<vmem>>, vector<1x32xf32>
    %48 = vector.broadcast %47 : vector<1x32xf32> to vector<16x32xf32>
    %49 = arith.addf %46, %48 : vector<16x32xf32>
    %cst_29 = arith.constant 0.000000e+00 : f32
    %50 = vector.broadcast %cst_29 : f32 to vector<16x32xf32>
    %51 = arith.maximumf %49, %50 : vector<16x32xf32>
    %52 = arith.truncf %51 : vector<16x32xf32> to vector<16x32xbf16>
    %c0_30 = arith.constant 0 : index
    %c0_31 = arith.constant 0 : index
    %53 = vector.load %arg12[%c0_30, %c0_31] : memref<32x256xbf16, #tpu.memory_space<vmem>>, vector<32x256xbf16>
    %cst_32 = arith.constant dense<0.000000e+00> : vector<16x256xf32>
    %54 = tpu.matmul %52, %53, %cst_32 {dimension_numbers = #tpu.dot_dimension_numbers<[1], [0], [0], [1], [0, 0, 1, 1], [], []>} : vector<16x32xbf16>, vector<32x256xbf16>, vector<16x256xf32> -> vector<16x256xf32>
    %c0_33 = arith.constant 0 : index
    %c0_34 = arith.constant 0 : index
    %55 = vector.load %arg13[%c0_33, %c0_34] : memref<1x256xf32, #tpu.memory_space<vmem>>, vector<1x256xf32>
    %56 = vector.broadcast %55 : vector<1x256xf32> to vector<16x256xf32>
    %57 = arith.addf %54, %56 : vector<16x256xf32>
    %58 = vector.extract_strided_slice %57 {offsets = [0, 0], sizes = [16, 6], strides = [1, 1]} : vector<16x256xf32> to vector<16x6xf32>
    %59 = math.tanh %58 : vector<16x6xf32>
    %60 = vector.extract_strided_slice %57 {offsets = [0, 128], sizes = [16, 32], strides = [1, 1]} : vector<16x256xf32> to vector<16x32xf32>
    %cst_35 = arith.constant 0.000000e+00 : f32
    %61 = vector.broadcast %cst_35 : f32 to vector<16x32xf32>
    %62 = arith.maximumf %60, %61 : vector<16x32xf32>
    %63 = arith.truncf %62 : vector<16x32xf32> to vector<16x32xbf16>
    %c0_36 = arith.constant 0 : index
    %c0_37 = arith.constant 0 : index
    %64 = vector.load %arg14[%c0_36, %c0_37] : memref<32x8xbf16, #tpu.memory_space<vmem>>, vector<32x8xbf16>
    %cst_38 = arith.constant dense<0.000000e+00> : vector<16x8xf32>
    %65 = tpu.matmul %63, %64, %cst_38 {dimension_numbers = #tpu.dot_dimension_numbers<[1], [0], [0], [1], [0, 0, 1, 1], [], []>} : vector<16x32xbf16>, vector<32x8xbf16>, vector<16x8xf32> -> vector<16x8xf32>
    %c0_39 = arith.constant 0 : index
    %c0_40 = arith.constant 0 : index
    %66 = vector.load %arg15[%c0_39, %c0_40] : memref<1x8xf32, #tpu.memory_space<vmem>>, vector<1x8xf32>
    %67 = vector.broadcast %66 : vector<1x8xf32> to vector<16x8xf32>
    %68 = arith.addf %65, %67 : vector<16x8xf32>
    %69 = tpu.concatenate %59, %68, %27, %28, %33 in 1 : vector<16x6xf32>, vector<16x8xf32>, vector<16x4xf32>, vector<16x4xf32>, vector<16x4xf32> -> vector<16x26xf32>
    %cst_41 = arith.constant 0.000000e+00 : f32
    %70 = vector.broadcast %cst_41 : f32 to vector<16x102xf32>
    %71 = tpu.concatenate %69, %70 in 1 : vector<16x26xf32>, vector<16x102xf32> -> vector<16x128xf32>
    %c0_42 = arith.constant 0 : index
    %c0_43 = arith.constant 0 : index
    %72 = vector.load %arg16[%c0_42, %c0_43] : memref<16x128xf32, #tpu.memory_space<vmem>>, vector<16x128xf32>
    tpu.vector_store %arg16[%c0_42, %c0_43], %71 {strides = array<i32>} : memref<16x128xf32, #tpu.memory_space<vmem>>, vector<16x128xf32>,
    return
  }
  func.func @transform_0(%arg0: i32) -> (i32, i32) {
    %c0_i32 = arith.constant 0 : i32
    %c0_i32_0 = arith.constant 0 : i32
    return %arg0, %c0_i32 : i32, i32
  }
  func.func @transform_1(%arg0: i32) -> (i32, i32) {
    %c0_i32 = arith.constant 0 : i32
    %c0_i32_0 = arith.constant 0 : i32
    %c0_i32_1 = arith.constant 0 : i32
    return %c0_i32, %c0_i32_0 : i32, i32
  }
  func.func @transform_2(%arg0: i32) -> (i32, i32) {
    %c0_i32 = arith.constant 0 : i32
    %c0_i32_0 = arith.constant 0 : i32
    %c0_i32_1 = arith.constant 0 : i32
    return %c0_i32, %c0_i32_0 : i32, i32
  }
  func.func @transform_3(%arg0: i32) -> (i32, i32) {
    %c0_i32 = arith.constant 0 : i32
    %c0_i32_0 = arith.constant 0 : i32
    %c0_i32_1 = arith.constant 0 : i32
    return %c0_i32, %c0_i32_0 : i32, i32
  }
  func.func @transform_4(%arg0: i32) -> (i32, i32) {
    %c0_i32 = arith.constant 0 : i32
    %c0_i32_0 = arith.constant 0 : i32
    %c0_i32_1 = arith.constant 0 : i32
    return %c0_i32, %c0_i32_0 : i32, i32
  }
  func.func @transform_5(%arg0: i32) -> (i32, i32) {
    %c0_i32 = arith.constant 0 : i32
    %c0_i32_0 = arith.constant 0 : i32
    %c0_i32_1 = arith.constant 0 : i32
    return %c0_i32, %c0_i32_0 : i32, i32
  }
  func.func @transform_6(%arg0: i32) -> (i32, i32) {
    %c0_i32 = arith.constant 0 : i32
    %c0_i32_0 = arith.constant 0 : i32
    %c0_i32_1 = arith.constant 0 : i32
    return %c0_i32, %c0_i32_0 : i32, i32
  }
  func.func @transform_7(%arg0: i32) -> (i32, i32) {
    %c0_i32 = arith.constant 0 : i32
    %c0_i32_0 = arith.constant 0 : i32
    %c0_i32_1 = arith.constant 0 : i32
    return %c0_i32, %c0_i32_0 : i32, i32
  }
  func.func @transform_8(%arg0: i32) -> (i32, i32) {
    %c0_i32 = arith.constant 0 : i32
    %c0_i32_0 = arith.constant 0 : i32
    %c0_i32_1 = arith.constant 0 : i32
    return %c0_i32, %c0_i32_0 : i32, i32
  }
  func.func @transform_9(%arg0: i32) -> (i32, i32) {
    %c0_i32 = arith.constant 0 : i32
    %c0_i32_0 = arith.constant 0 : i32
    %c0_i32_1 = arith.constant 0 : i32
    return %c0_i32, %c0_i32_0 : i32, i32
  }
  func.func @transform_10(%arg0: i32) -> (i32, i32) {
    %c0_i32 = arith.constant 0 : i32
    %c0_i32_0 = arith.constant 0 : i32
    %c0_i32_1 = arith.constant 0 : i32
    return %c0_i32, %c0_i32_0 : i32, i32
  }
  func.func @transform_11(%arg0: i32) -> (i32, i32) {
    %c0_i32 = arith.constant 0 : i32
    %c0_i32_0 = arith.constant 0 : i32
    %c0_i32_1 = arith.constant 0 : i32
    return %c0_i32, %c0_i32_0 : i32, i32
  }
  func.func @transform_12(%arg0: i32) -> (i32, i32) {
    %c0_i32 = arith.constant 0 : i32
    %c0_i32_0 = arith.constant 0 : i32
    %c0_i32_1 = arith.constant 0 : i32
    return %c0_i32, %c0_i32_0 : i32, i32
  }
  func.func @transform_13(%arg0: i32) -> (i32, i32) {
    %c0_i32 = arith.constant 0 : i32
    %c0_i32_0 = arith.constant 0 : i32
    %c0_i32_1 = arith.constant 0 : i32
    return %c0_i32, %c0_i32_0 : i32, i32
  }
  func.func @transform_14(%arg0: i32) -> (i32, i32) {
    %c0_i32 = arith.constant 0 : i32
    %c0_i32_0 = arith.constant 0 : i32
    %c0_i32_1 = arith.constant 0 : i32
    return %c0_i32, %c0_i32_0 : i32, i32
  }
  func.func @transform_15(%arg0: i32) -> (i32, i32) {
    %c0_i32 = arith.constant 0 : i32
    %c0_i32_0 = arith.constant 0 : i32
    return %arg0, %c0_i32 : i32, i32
  }
}

</mosaic_0001>

<bundles_post_ra>
// kernel: tpu_custom_call.1
= control target key start
LH: loop header
LB: loop body
LE: loop exit
PB: predicated region body
PF: predicated region fallthrough
CT: control target
= control target key end

     0   :  { %20 = vsyncpa [#allocation3], 0  ;;  %s1462_s0 = inlined_call_operand.hbm [shape: f32[16,18], index: 0, kind: input, shape index: {}]   ;;  %s1463_s1 = inlined_call_operand.hbm [shape: bf16[18,160], index: 1, kind: input, shape index: {}]   ;;  %s1464_s2 = inlined_call_operand.vmem [shape: f32[1,160], index: 2, kind: input, shape index: {}]   ;;  %s1465_s3 = inlined_call_operand.hbm [shape: bf16[32,32], index: 3, kind: input, shape index: {}]   ;;  %s1466_s4 = inlined_call_operand.hbm [shape: f32[1,32], index: 4, kind: input, shape index: {}]   ;;  %s1467_s5 = inlined_call_operand.vmem [shape: bf16[32,256], index: 5, kind: input, shape index: {}]   ;;  %s1468_s6 = inlined_call_operand.hbm [shape: f32[1,256], index: 6, kind: input, shape index: {}]   ;;  %s1469_s7 = inlined_call_operand.hbm [shape: bf16[4,32], index: 7, kind: input, shape index: {}]   ;;  %s1470_s8 = inlined_call_operand.hbm [shape: f32[1,32], index: 8, kind: input, shape index: {}]   ;;  %s1471_s9 = inlined_call_operand.vmem [shape: bf16[32,32], index: 9, kind: input, shape index: {}]   ;;  %s1472_s10 = inlined_call_operand.vmem [shape: f32[1,32], index: 10, kind: input, shape index: {}]   ;;  %s1473_s11 = inlined_call_operand.hbm [shape: bf16[32,256], index: 11, kind: input, shape index: {}]   ;;  %s1474_s12 = inlined_call_operand.vmem [shape: f32[1,256], index: 12, kind: input, shape index: {}]   ;;  %s1475_s13 = inlined_call_operand.vmem [shape: bf16[32,8], index: 13, kind: input, shape index: {}]   ;;  %s1476_s14 = inlined_call_operand.vmem [shape: f32[1,8], index: 14, kind: input, shape index: {}]   ;;  %s1477_s15 = inlined_call_operand.hbm [shape: f32[16,128], index: 15, kind: output, shape index: {}]  }
   0x1   :  { %21 = vsyncpa [#allocation6], 0 }
   0x2   :  { %22 = vsyncpa [#allocation9], 0 }
   0x3   :  { %23 = vsyncpa [#allocation12], 0 }
   0x4   :  { %24 = vsyncpa [#allocation15], 0 }
   0x5   :  { %25 = vsyncpa [#allocation4], 0  ;;  %s1115_s18 = smov [#allocation5]   ;;  %s1116_s20 = smov [#allocation8]  }
   0x6   :  { %s43_s19 = sshll.u32 %s1115_s18, 4  ;;  %s70_s21 = sshll.u32 %s1116_s20, 4  ;;  %s44_s19 = int_to_ptr.vmem [resolvable:$true] %s43_s19  ;;  %s1215_s21 = int_to_ptr.vmem [resolvable:$true] %s70_s21 }
   0x7   :  { %s905_s24 = scalar_lea.hbm %s1463_s1, 384 }
   0x8   :  { %p906_p0 = scmp.ne.s32.totalorder %s1463_s1, %s905_s24  ;;  %p909_p1 = scmp.lt.u32.totalorder %s905_s24, %s1463_s1 }
   0xa   :  { %p911_p2 = pnand %p909_p1, %p906_p0 }
   0xc   :  { %914 = shalt.err (!%p911_p2)
}
   0xd   :  { %s915_s29 = scalar_lea.vmem %s44_s19, 384  ;;  %p920_p4 = scmp.lt.s32.totalorder %s44_s19, %s44_s19 }
   0xe   :  { %p916_p3 = scmp.ne.s32.totalorder %s44_s19, %s915_s29  ;;  %p921_p5 = scmp.lt.s32.totalorder %s915_s29, %s915_s29 }
  0x10   :  { %p922_p6 = por %p921_p5, %p920_p4 }
  0x12   :  { %p923_p7 = pnand %p922_p6, %p916_p3 }
  0x14   :  { %926 = shalt.err (!%p923_p7)
}
  0x15   :  { %s1117_s30 = smov 128   ;;  %s1118_s16 = smov 8  }
  0x16   :  { %49 = dma.hbm_to_vmem [thread:$0]  %s1463_s1, 384, %s44_s19, [#allocation6], %s1117_s30, %s1117_s30, %s1118_s16  }
  0x17   :  { %s927_s23 = scalar_lea.hbm %s1466_s4, 16 }
  0x18   :  { %p928_p8 = scmp.ne.s32.totalorder %s1466_s4, %s927_s23  ;;  %p931_p9 = scmp.lt.u32.totalorder %s927_s23, %s1466_s4 }
  0x1a   :  { %p933_p10 = pnand %p931_p9, %p928_p8 }
  0x1c   :  { %936 = shalt.err (!%p933_p10)
}
  0x1d   :  { %s937_s28 = scalar_lea.vmem %s1215_s21, 16  ;;  %s941_s1 = scalar_lea.vmem %s1215_s21, 32 }
  0x1e   :  { %p938_p11 = scmp.ne.s32.totalorder %s1215_s21, %s937_s28  ;;  %p942_p12 = scmp.lt.s32.totalorder %s1215_s21, %s1215_s21 }
  0x1f   :  { %p943_p13 = scmp.lt.s32.totalorder %s941_s1, %s937_s28 }
  0x21   :  { %p944_p0 = por %p943_p13, %p942_p12 }
  0x23   :  { %p945_p1 = pnand %p944_p0, %p938_p11 }
  0x25   :  { %948 = shalt.err (!%p945_p1)
}
  0x26   :  { %73 = dma.hbm_to_vmem [thread:$0]  %s1466_s4, 16, %s1215_s21, [#allocation9]  }
  0x27   :  { %s1119_s17 = smov [#allocation11]   ;;  %s1120_s20 = smov [#allocation2]  }
  0x28   :  { %s92_s18 = sshll.u32 %s1119_s17, 4  ;;  %s31_s22 = sshll.u32 %s1120_s20, 4  ;;  %s93_s18 = int_to_ptr.vmem [resolvable:$true] %s92_s18  ;;  %s1250_s22 = int_to_ptr.vmem [resolvable:$true] %s31_s22 }
  0x29   :  { %s949_s25 = scalar_lea.hbm %s1469_s7, 32 }
  0x2a   :  { %p950_p2 = scmp.ne.s32.totalorder %s1469_s7, %s949_s25  ;;  %p953_p3 = scmp.lt.u32.totalorder %s949_s25, %s1469_s7 }
  0x2c   :  { %p955_p4 = pnand %p953_p3, %p950_p2 }
  0x2e   :  { %958 = shalt.err (!%p955_p4)
}
  0x2f   :  { %s959_s4 = scalar_lea.vmem %s93_s18, 32  ;;  %p964_p6 = scmp.lt.s32.totalorder %s93_s18, %s93_s18 }
  0x30   :  { %p960_p5 = scmp.ne.s32.totalorder %s93_s18, %s959_s4  ;;  %p965_p7 = scmp.lt.s32.totalorder %s959_s4, %s959_s4 }
  0x32   :  { %p966_p8 = por %p965_p7, %p964_p6 }
  0x34   :  { %p967_p9 = pnand %p966_p8, %p960_p5 }
  0x36   :  { %970 = shalt.err (!%p967_p9)
}
  0x37   :  { %95 = dma.hbm_to_vmem [thread:$0]  %s1469_s7, 32, %s93_s18, [#allocation12]  }
  0x38   :  { %s971_s20 = scalar_lea.hbm %s1462_s0, 256 }
  0x39   :  { %p972_p10 = scmp.ne.s32.totalorder %s1462_s0, %s971_s20  ;;  %p975_p11 = scmp.lt.u32.totalorder %s971_s20, %s1462_s0 }
  0x3b   :  { %p977_p12 = pnand %p975_p11, %p972_p10 }
  0x3d   :  { %980 = shalt.err (!%p977_p12)
}
  0x3e   :  { %s981_s27 = scalar_lea.vmem %s1250_s22, 256  ;;  %p986_p0 = scmp.lt.s32.totalorder %s1250_s22, %s1250_s22 }
  0x3f   :  { %p982_p13 = scmp.ne.s32.totalorder %s1250_s22, %s981_s27  ;;  %p987_p1 = scmp.lt.s32.totalorder %s981_s27, %s981_s27 }
  0x41   :  { %p988_p2 = por %p987_p1, %p986_p0 }
  0x43   :  { %p989_p3 = pnand %p988_p2, %p982_p13 }
  0x45   :  { %992 = shalt.err (!%p989_p3)
}
  0x46   :  { %37 = dma.hbm_to_vmem [thread:$0]  %s1462_s0, 256, %s1250_s22, [#allocation3], %s1117_s30, %s1117_s30, %s1118_s16  }
  0x47   :  { %s1121_s28 = smov [#allocation7]   ;;  %s993_s19 = scalar_lea.hbm %s1465_s3, 256 }
  0x48   :  { %s57_s1 = sshll.u32 %s1121_s28, 4  ;;  %p994_p4 = scmp.ne.s32.totalorder %s1465_s3, %s993_s19  ;;  %s58_s1 = int_to_ptr.vmem [resolvable:$true] %s57_s1 }
  0x49   :  { %p997_p5 = scmp.lt.u32.totalorder %s993_s19, %s1465_s3 }
  0x4b   :  { %p999_p6 = pnand %p997_p5, %p994_p4 }
  0x4d   :  { %1002 = shalt.err (!%p999_p6)
}
  0x4e   :  { %s1003_s24 = scalar_lea.vmem %s58_s1, 256  ;;  %p1008_p8 = scmp.lt.s32.totalorder %s58_s1, %s58_s1 }
  0x4f   :  { %p1004_p7 = scmp.ne.s32.totalorder %s58_s1, %s1003_s24  ;;  %p1009_p9 = scmp.lt.s32.totalorder %s1003_s24, %s1003_s24 }
  0x51   :  { %p1010_p10 = por %p1009_p9, %p1008_p8 }
  0x53   :  { %p1011_p11 = pnand %p1010_p10, %p1004_p7 }
  0x55   :  { %1014 = shalt.err (!%p1011_p11)
}
  0x56   :  { %s1122_s0 = smov 64   ;;  %s1123_s22 = smov 4  }
  0x57   :  { %63 = dma.hbm_to_vmem [thread:$0]  %s1465_s3, 256, %s58_s1, [#allocation6], %s1122_s0, %s1122_s0, %s1123_s22  }
  0x58   :  { %s1124_s27 = smov [#allocation10]   ;;  %s1125_s18 = smov [#allocation13]  }
  0x59   :  { %s82_s7 = sshll.u32 %s1124_s27, 4  ;;  %s102_s28 = sshll.u32 %s1125_s18, 4  ;;  %s83_s7 = int_to_ptr.vmem [resolvable:$true] %s82_s7  ;;  %s103_s28 = int_to_ptr.vmem [resolvable:$true] %s102_s28 }
  0x5a   :  { %s1015_s19 = scalar_lea.hbm %s1468_s6, 32 }
  0x5b   :  { %p1016_p12 = scmp.ne.s32.totalorder %s1468_s6, %s1015_s19  ;;  %p1019_p13 = scmp.lt.u32.totalorder %s1015_s19, %s1468_s6 }
  0x5d   :  { %p1021_p0 = pnand %p1019_p13, %p1016_p12 }
  0x5f   :  { %1024 = shalt.err (!%p1021_p0)
}
  0x60   :  { %s1025_s3 = scalar_lea.vmem %s83_s7, 32  ;;  %p1030_p2 = scmp.lt.s32.totalorder %s83_s7, %s83_s7 }
  0x61   :  { %p1026_p1 = scmp.ne.s32.totalorder %s83_s7, %s1025_s3  ;;  %p1031_p3 = scmp.lt.s32.totalorder %s1025_s3, %s1025_s3 }
  0x63   :  { %p1032_p4 = por %p1031_p3, %p1030_p2 }
  0x65   :  { %p1033_p5 = pnand %p1032_p4, %p1026_p1 }
  0x67   :  { %1036 = shalt.err (!%p1033_p5)
}
  0x68   :  { %85 = dma.hbm_to_vmem [thread:$0]  %s1468_s6, 32, %s83_s7, [#allocation9]  }
  0x69   :  { %s1037_s25 = scalar_lea.hbm %s1470_s8, 16 }
  0x6a   :  { %p1038_p6 = scmp.ne.s32.totalorder %s1470_s8, %s1037_s25  ;;  %p1041_p7 = scmp.lt.u32.totalorder %s1037_s25, %s1470_s8 }
  0x6c   :  { %p1043_p8 = pnand %p1041_p7, %p1038_p6 }
  0x6e   :  { %1046 = shalt.err (!%p1043_p8)
}
  0x6f   :  { %s1047_s21 = scalar_lea.vmem %s103_s28, 16  ;;  %s1051_s19 = scalar_lea.vmem %s103_s28, 32 }
  0x70   :  { %p1048_p9 = scmp.ne.s32.totalorder %s103_s28, %s1047_s21  ;;  %p1052_p10 = scmp.lt.s32.totalorder %s103_s28, %s103_s28 }
  0x71   :  { %p1053_p11 = scmp.lt.s32.totalorder %s1051_s19, %s1047_s21 }
  0x73   :  { %p1054_p12 = por %p1053_p11, %p1052_p10 }
  0x75   :  { %p1055_p13 = pnand %p1054_p12, %p1048_p9 }
  0x77   :  { %1058 = shalt.err (!%p1055_p13)
}
  0x78   :  { %105 = dma.hbm_to_vmem [thread:$0]  %s1470_s8, 16, %s103_s28, [#allocation12]  }
  0x79   :  { %s1126_s29 = smov [#allocation14]   ;;  %s1059_s3 = scalar_lea.hbm %s1473_s11, 512 }
  0x7a   :  { %s115_s17 = sshll.u32 %s1126_s29, 4  ;;  %p1060_p0 = scmp.ne.s32.totalorder %s1473_s11, %s1059_s3  ;;  %s116_s17 = int_to_ptr.vmem [resolvable:$true] %s115_s17 }
  0x7b   :  { %p1063_p1 = scmp.lt.u32.totalorder %s1059_s3, %s1473_s11 }
  0x7d   :  { %p1065_p2 = pnand %p1063_p1, %p1060_p0 }
  0x7f   :  { %1068 = shalt.err (!%p1065_p2)
}
  0x80   :  { %s1069_s25 = scalar_lea.vmem %s116_s17, 512  ;;  %p1074_p4 = scmp.lt.s32.totalorder %s116_s17, %s116_s17 }
  0x81   :  { %p1070_p3 = scmp.ne.s32.totalorder %s116_s17, %s1069_s25  ;;  %p1075_p5 = scmp.lt.s32.totalorder %s1069_s25, %s1069_s25 }
  0x83   :  { %p1076_p6 = por %p1075_p5, %p1074_p4 }
  0x85   :  { %p1077_p7 = pnand %p1076_p6, %p1070_p3 }
  0x87   :  { %1080 = shalt.err (!%p1077_p7)
}
  0x88   :  { %121 = dma.hbm_to_vmem [thread:$0]  %s1473_s11, 512, %s116_s17, [#allocation15], %s1117_s30, %s1117_s30, %s1118_s16  }
  0x89   :  { %1103 = dma.done.wait [#allocation3], 256  }
  0x8a   :  { %1104 = vsyncadd [#allocation3], 4294967040 }
  0x8b   :  { %1105 = dma.done.wait [#allocation6], 640  }
  0x8c   :  { %1106 = vsyncadd [#allocation6], 4294966656 }
  0x8d   :  { %1107 = dma.done.wait [#allocation9], 48  }
  0x8e   :  { %1108 = vsyncadd [#allocation9], 4294967248 }
  0x8f   :  { %1109 = dma.done.wait [#allocation12], 48  }
  0x90   :  { %1110 = vsyncadd [#allocation12], 4294967248 }
  0x91   :  { %1111 = dma.done.wait [#allocation15], 512  }
  0x92   :  { %1112 = vsyncadd [#allocation15], 4294966784  ;;  %v1127_v0 = vmov 0   ;;  %v870_v1 = vld [vmem:[#allocation5 + $0x4] ss:$8 sps:$4 sm:$0xff]   ;;  %vm190_vm0 = vcmask 1040384   ;;  %v161_v13 = vlaneseq }
  0x93   :  { %229 = vmatprep.mubr.bf16.mxu0 %v1127_v0  ;;  %v872_v2 = vld [vmem:[#allocation5] ss:$8 sps:$4 sm:$0xff]   ;;  %v158_v3 = vld [vmem:[#allocation5 + $0x10] sm:$0x11]  ;;  %197 = vmatprep.subr.bf16.mxu0 %v870_v1  ;;  %v1338_v7 = vld [vmem:[#allocation2 + $0x8] sm:$0xff]  ;;  %vm186_vm1 = vcmask 146432  }
  0x94   :  { %v782_v4 = vcombine.high %v158_v3, %v158_v3  ;;  %v781_v5 = vcombine.low %v158_v3, %v158_v3  ;;  %v1336_v6 = vld [vmem:[#allocation2] sm:$0xff]  ;;  %198 = vmatpush1.bf16.msra.mxu0 %v872_v2  ;;  %v875_v10 = vld [vmem:[#allocation7] sm:$0xff]   ;;  %v1128_v11 = vmov 0.0   ;;  %v876_v12 = vld [vmem:[#allocation7 + $0x8] sm:$0xff]   ;;  %vm1129_vm2 = vmmov 0   ;;  %s1131_s29 = smov 18  }
  0x95   :  { %v155_v9 = vpack.c.bf16 %v1338_v7, %v1336_v6  ;;  %820 = vmatprep.subr.bf16.mxu1 %v1128_v11  ;;  %824 = vmatprep.mubr.msk.bf16.mxu1 %vm1129_vm2, %v1128_v11  ;;  %v162_v14 = vshrl.u32 %v161_v13, 7  ;;  %v159_v16 = vld [vmem:[%s1464_s2] sm:$0x3]  ;;  %vm270_vm3 = vcmask 261120   ;;  %v879_v35 = vld [vmem:[%s1467_s5 + $0x4] ss:$8 sps:$4 sm:$0xff]  }
  0x96   :  { %783 = vmatprep.subr.msk.bf16.mxu0 %vm190_vm0, %v782_v4  ;;  %v192_v8 = vsel %vm190_vm0, %v781_v5, 0  ;;  %821 = vmatpush3.bf16.msra.mxu1 %v875_v10  ;;  %v877_v36 = vld [vmem:[%s1467_s5] ss:$8 sps:$4 sm:$0xff]   ;;  %v882_v37 = vld [vmem:[%s1467_s5 + $0x14] ss:$8 sps:$4 sm:$0xff]   ;;  %vm444_vm4 = vcmask 1041408  }
  0x97   :  { %822 = vmatprep.subr.bf16.mxu1 %v1128_v11  ;;  %v1349_v15 = vsub.s32 0, %v162_v14  ;;  %v1354_v17 = vsub.s32 1, %v162_v14  ;;  %v880_v38 = vld [vmem:[%s1467_s5 + $0x10] ss:$8 sps:$4 sm:$0xff]   ;;  %s1130_s5 = smov 14   ;;  %s1132_s17 = smov 114  }
  0x98   :  { %200 = vmatpush1.bf16.msra.mxu0 %v192_v8  ;;  %v785_v39 = vld [vmem:[#allocation8] ss:$0 sm:$0xff]  ;;  %v322_v49 = vld [vmem:[#allocation10] sm:$0x3]  ;;  %v429_v3 = vld [vmem:[#allocation11] sm:$0x3] }
  0x99   :  { %v164_v18 = vrot.slane %v159_v16, %v1349_v15  ;;  %v168_v19 = vrot.slane %v159_v16, %v1354_v17  ;;  %357 = vmatprep.subr.bf16.mxu0 %v879_v35  ;;  %v327_v50 = vrot.slane %v322_v49, %v1349_v15  ;;  %v331_v51 = vrot.slane %v322_v49, %v1354_v17  ;;  %v568_v49 = vld [vmem:[%s1474_s12] sm:$0x3]  ;;  %s1133_s12 = smov 6  }
  0x9a   :  { %823 = vmatpush3.bf16.msra.mxu1 %v876_v12  ;;  %v446_v4 = vsel %vm444_vm4, %v429_v3, 0  ;;  %vm440_vm5 = vcmask 31744   ;;  %vm742_vm6 = vcmask 48128   ;;  %vm745_vm7 = vcmask 113664  }
  0x9b   :  { %784 = vmatmul.mubr.msk.bf16.vlgmr.msra.gmra.mrb[0].mxu0 %vm186_vm1, %v155_v9  ;;  %828 = vmatprep.subr.bf16.mxu1 %v1128_v11  ;;  %vm750_vm8 = vcmask 179200   ;;  %vm753_vm9 = vcmask 211968  }
  0x9c   :  { %389 = vmatprep.mubr.bf16.mxu0 %v1127_v0  ;;  %358 = vmatpush1.bf16.msra.mxu0 %v877_v36 }
  0x9d   :  { %359 = vmatprep.subr.bf16.mxu0 %v882_v37  ;;  %v887_v37 = vld [vmem:[#allocation14 + $0x4] ss:$8 sps:$4 sm:$0xff]  }
  0xa0   :  { %360 = vmatpush1.bf16.msra.mxu0 %v880_v38  ;;  %v885_v38 = vld [vmem:[#allocation14] ss:$8 sps:$4 sm:$0xff]  }
  0xa1   :  { %834 = vmatprep.subr.bf16.mxu0 %v1128_v11 }
 0x16e   :  { %v231_v20 = vpop.f32.mrb[0].mxu0 }
 0x16f   :  { %v1358_v21 = vadd.f32 %v231_v20, %v164_v18  ;;  %v233_v22 = vpop.f32.mrb[1].mxu0 }
 0x170   :  { %v234_v23 = vadd.f32 %v233_v22, %v168_v19  ;;  %v235_v24 = vpop.f32.mrb[2].mxu0  ;;  %v884_v22 = vld [vmem:[%s1471_s9 + $0x8] sm:$0xff]  }
 0x171   :  { %v1360_v25 = vadd.f32 %v235_v24, %v164_v18  ;;  %v237_v26 = vpop.f32.mrb[3].mxu0  ;;  %v240_v27 = vmax.f32 %v1358_v21, 0.0  ;;  %v796_v21 = vld [vmem:[%s1472_s10] ss:$0 sm:$0xff] }
 0x172   :  { %v241_v28 = vmax.f32 %v234_v23, 0.0  ;;  %v238_v29 = vadd.f32 %v237_v26, %v168_v19  ;;  %v794_v23 = vld [vmem:[#allocation13] ss:$0 sm:$0xff] }
 0x173   :  { %v242_v30 = vmax.f32 %v1360_v25, 0.0 }
 0x174   :  { %v243_v31 = vmax.f32 %v238_v29, 0.0  ;;  %v244_v32 = vmul.f32 %v241_v28, %v240_v27 }
 0x176   :  { %v245_v33 = vmul.f32 %v243_v31, %v242_v30 }
 0x178   :  { %v246_v34 = vpack.c.bf16 %v245_v33, %v244_v32 }
 0x17a   :  { %825 = vmatmul.mubr.msk.bf16.vlgmr.msra.gmra.mrb[0].mxu1 %vm270_vm3, %v246_v34 }
 0x17b   :  { %830 = vmatprep.mubr.msk.bf16.mxu1 %vm1129_vm2, %v1128_v11  ;;  %829 = vmatpush3.bf16.msra.mxu1 %v446_v4 }
 0x17c   :  { %603 = vmatprep.subr.bf16.mxu1 %v887_v37 }
 0x24d   :  { %v308_v40 = vpop.f32.mrb[0].mxu1 }
 0x24e   :  { %v309_v41 = vadd.f32 %v785_v39, %v308_v40  ;;  %v826_v42 = vpop.f32.mrb[1].mxu1  ;;  %v888_v40 = vld [vmem:[#allocation14 + $0x10] ss:$8 sps:$4 sm:$0xff]  }
 0x24f   :  { %v311_v43 = vpop.f32.mrb[2].mxu1 }
 0x250   :  { %v312_v44 = vadd.f32 %v785_v39, %v311_v43  ;;  %v827_v45 = vpop.f32.mrb[3].mxu1  ;;  %v315_v46 = vmax.f32 %v309_v41, 0.0  ;;  %v890_v39 = vld [vmem:[#allocation14 + $0x14] ss:$8 sps:$4 sm:$0xff]  }
 0x252   :  { %v316_v47 = vmax.f32 %v312_v44, 0.0 }
 0x254   :  { %v317_v48 = vpack.c.bf16 %v316_v47, %v315_v46  ;;  %v891_v47 = vld [vmem:[%s1475_s13] sm:$0xff]  }
 0x256   :  { %793 = vmatmul.mubr.msk.bf16.vlgmr.msra.gmra.mrb[4].mxu0 %vm270_vm3, %v317_v48  ;;  %v892_v48 = vld [vmem:[%s1475_s13 + $0x8] sm:$0xff]  }
 0x257   :  { %838 = vmatprep.mubr.msk.bf16.mxu0 %vm1129_vm2, %v1128_v11 }
 0x329   :  { %v391_v52 = vpop.f32.mrb[4].mxu0 }
 0x32a   :  { %v392_v53 = vadd.f32 %v391_v52, %v327_v50  ;;  %v393_v54 = vpop.f32.mrb[5].mxu0 }
 0x32b   :  { %v394_v55 = vadd.f32 %v393_v54, %v331_v51  ;;  %v395_v56 = vpop.f32.mrb[6].mxu0 }
 0x32c   :  { %v397_v57 = vpop.f32.mrb[7].mxu0  ;;  %418 = vrot.lane.b32.xlu1 %v392_v53, %s1130_s5  ;;  %v396_v60 = vadd.f32 %v395_v56, %v327_v50  ;;  %v577_v50 = vrot.slane %v568_v49, %v1354_v17 }
 0x32d   :  { %v400_v58 = vmul.f32 0.5, %v394_v55  ;;  %v398_v59 = vadd.f32 %v397_v57, %v331_v51 }
 0x32f   :  { %v402_v61 = vmul.f32 1.442695, %v400_v58  ;;  %v401_v62 = vmul.f32 0.5, %v398_v59 }
 0x330   :  { %420 = vrot.lane.b32.xlu1 %v396_v60, %s1130_s5 }
 0x331   :  { %893 = vpow2.f32 %v402_v61  ;;  %v404_v63 = vmul.f32 1.442695, %v401_v62 }
 0x333   :  { %895 = vpow2.f32 %v404_v63 }
 0x334   :  { %728 = vrot.lane.b32.xlu1 %v394_v55, %s1131_s29 }
 0x33b   :  { %v894_v1 = vpop.eup %893 }
 0x33c   :  { %408 = vrot.lane.b32.xlu0 %v894_v1, %s1130_s5 }
 0x33d   :  { %v896_v2 = vpop.eup %895 }
 0x340   :  { %410 = vrot.lane.b32.xlu0 %v896_v2, %s1130_s5  ;;  %v573_v2 = vrot.slane %v568_v49, %v1349_v15 }
 0x39e   :  { %v1389_v5 = vpop.permute.xlu1 %418 }
 0x3a2   :  { %v1396_v14 = vpop.permute.xlu1 %420 }
 0x3ae   :  { %v409_v8 = vpop.permute.xlu0 %408 }
 0x3af   :  { %v414_v9 = vmul.f32 %v409_v8, %v1336_v6  ;;  %v729_v8 = vpop.permute.xlu1 %728 }
 0x3b1   :  { %v1393_v10 = vadd.f32 %v1389_v5, %v414_v9 }
 0x3b2   :  { %v411_v12 = vpop.permute.xlu0 %410 }
 0x3b3   :  { %v415_v13 = vmul.f32 %v411_v12, %v1338_v7  ;;  %897 = vtanh.f32 %v1393_v10  ;;  %v883_v7 = vld [vmem:[%s1471_s9] sm:$0xff]  }
 0x3b4   :  { %835 = vmatpush3.bf16.msra.mxu0 %v883_v7 }
 0x3b5   :  { %v1399_v16 = vadd.f32 %v1396_v14, %v415_v13  ;;  %836 = vmatprep.subr.bf16.mxu0 %v1128_v11 }
 0x3b7   :  { %899 = vtanh.f32 %v1399_v16 }
 0x3b8   :  { %837 = vmatpush3.bf16.msra.mxu0 %v884_v22 }
 0x3b9   :  { %842 = vmatprep.subr.bf16.mxu0 %v1128_v11 }
 0x3bd   :  { %v898_v18 = vpop.eup %897 }
 0x3c1   :  { %v900_v19 = vpop.eup %899 }
 0x3c2   :  { %v428_v20 = vpack.c.bf16 %v900_v19, %v898_v18 }
 0x3c4   :  { %438 = vrot.lane.b32.xlu0 %v428_v20, %s1132_s17 }
 0x3c8   :  { %730 = vrot.lane.b32.xlu0 %v398_v59, %s1131_s29  ;;  %v805_v59 = vld [vmem:[%s1476_s14] ss:$0 sm:$0xff]  ;;  %s1134_s14 = smov [#allocation16]  }
 0x3c9   :  { %s763_s26 = sshll.u32 %s1134_s14, 4  ;;  %s764_s26 = int_to_ptr.vmem [resolvable:$true] %s763_s26 }
 0x3ca   :  { %s1081_s2 = scalar_lea.vmem %s764_s26, 256  ;;  %p1086_p9 = scmp.lt.s32.totalorder %s764_s26, %s764_s26 }
 0x3cb   :  { %p1082_p8 = scmp.ne.s32.totalorder %s764_s26, %s1081_s2  ;;  %p1087_p10 = scmp.lt.s32.totalorder %s1081_s2, %s1081_s2 }
 0x3cd   :  { %p1088_p11 = por %p1087_p10, %p1086_p9 }
 0x3cf   :  { %p1089_p12 = pnand %p1088_p11, %p1082_p8 }
 0x436   :  { %v439_v6 = vpop.permute.xlu0 %438 }
 0x437   :  { %831 = vmatmul.mubr.msk.bf16.vlgmr.msra.gmra.mrb[4].mxu1 %vm440_vm5, %v439_v6 }
 0x438   :  { %635 = vmatprep.mubr.bf16.mxu1 %v1127_v0  ;;  %604 = vmatpush1.bf16.msra.mxu1 %v885_v38 }
 0x439   :  { %605 = vmatprep.subr.bf16.mxu1 %v890_v39 }
 0x43a   :  { %v731_v9 = vpop.permute.xlu0 %730 }
 0x43c   :  { %606 = vmatpush1.bf16.msra.mxu1 %v888_v40 }
 0x50a   :  { %v482_v24 = vpop.f32.mrb[4].mxu1 }
 0x50b   :  { %v483_v26 = vadd.f32 %v794_v23, %v482_v24  ;;  %v832_v28 = vpop.f32.mrb[5].mxu1 }
 0x50c   :  { %v485_v29 = vpop.f32.mrb[6].mxu1 }
 0x50d   :  { %v489_v0 = vmax.f32 %v483_v26, 0.0  ;;  %v486_v31 = vadd.f32 %v794_v23, %v485_v29  ;;  %v833_v32 = vpop.f32.mrb[7].mxu1 }
 0x50f   :  { %v490_v33 = vmax.f32 %v486_v31, 0.0  ;;  %v491_v34 = vmul.f32 %v489_v0, %v240_v27 }
 0x511   :  { %v492_v35 = vmul.f32 %v490_v33, %v242_v30 }
 0x513   :  { %v493_v36 = vpack.c.bf16 %v492_v35, %v491_v34 }
 0x515   :  { %839 = vmatmul.mubr.msk.bf16.vlgmr.msra.gmra.mrb[8].mxu0 %vm270_vm3, %v493_v36 }
 0x516   :  { %846 = vmatprep.mubr.msk.bf16.mxu0 %vm1129_vm2, %v1128_v11  ;;  %843 = vmatpush3.bf16.msra.mxu0 %v891_v47 }
 0x517   :  { %844 = vmatprep.subr.bf16.mxu0 %v1128_v11 }
 0x51a   :  { %845 = vmatpush3.bf16.msra.mxu0 %v892_v48 }
 0x5e8   :  { %v554_v25 = vpop.f32.mrb[8].mxu0 }
 0x5e9   :  { %v555_v27 = vadd.f32 %v796_v21, %v554_v25  ;;  %v840_v30 = vpop.f32.mrb[9].mxu0 }
 0x5ea   :  { %v557_v41 = vpop.f32.mrb[10].mxu0 }
 0x5eb   :  { %v558_v42 = vadd.f32 %v796_v21, %v557_v41  ;;  %v841_v43 = vpop.f32.mrb[11].mxu0  ;;  %v561_v44 = vmax.f32 %v555_v27, 0.0 }
 0x5ed   :  { %v562_v45 = vmax.f32 %v558_v42, 0.0 }
 0x5ef   :  { %v563_v46 = vpack.c.bf16 %v562_v45, %v561_v44 }
 0x5f1   :  { %804 = vmatmul.mubr.msk.bf16.vlgmr.msra.gmra.mrb[8].mxu1 %vm270_vm3, %v563_v46 }
 0x6c4   :  { %v637_v51 = vpop.f32.mrb[8].mxu1 }
 0x6c5   :  { %v639_v52 = vpop.f32.mrb[9].mxu1  ;;  %v638_v3 = vadd.f32 %v637_v51, %v573_v2 }
 0x6c6   :  { %v640_v53 = vadd.f32 %v639_v52, %v577_v50  ;;  %v641_v54 = vpop.f32.mrb[10].mxu1 }
 0x6c7   :  { %v643_v55 = vpop.f32.mrb[11].mxu1  ;;  %v642_v4 = vadd.f32 %v641_v54, %v573_v2  ;;  %901 = vtanh.f32 %v638_v3 }
 0x6c8   :  { %v644_v56 = vadd.f32 %v643_v55, %v577_v50  ;;  %v648_v57 = vmax.f32 %v640_v53, 0.0 }
 0x6c9   :  { %903 = vtanh.f32 %v642_v4 }
 0x6ca   :  { %v649_v58 = vmax.f32 %v644_v56, 0.0 }
 0x6cc   :  { %v650_v11 = vpack.c.bf16 %v649_v58, %v648_v57 }
 0x6ce   :  { %847 = vmatmul.mubr.msk.bf16.vlgmr.msra.gmra.mrb[12].mxu0 %vm270_vm3, %v650_v11 }
 0x6d1   :  { %v902_v12 = vpop.eup %901 }
 0x6d3   :  { %v904_v19 = vpop.eup %903 }
 0x7a1   :  { %v711_v60 = vpop.f32.mrb[12].mxu0 }
 0x7a2   :  { %v712_v61 = vadd.f32 %v805_v59, %v711_v60  ;;  %v848_v62 = vpop.f32.mrb[13].mxu0 }
 0x7a3   :  { %v714_v63 = vpop.f32.mrb[14].mxu0 }
 0x7a4   :  { %v715_v17 = vadd.f32 %v805_v59, %v714_v63  ;;  %720 = vrot.lane.b32.xlu1 %v712_v61, %s1133_s12  ;;  %v849_v1 = vpop.f32.mrb[15].mxu0 }
 0x7a6   :  { %722 = vrot.lane.b32.xlu0 %v715_v17, %s1133_s12 }
 0x7a8   :  { %736 = vrot.lane.b32.xlu1 %v1393_v10, %s1118_s16 }
 0x7aa   :  { %738 = vrot.lane.b32.xlu0 %v1399_v16, %s1118_s16 }
 0x816   :  { %v721_v13 = vpop.permute.xlu1 %720 }
 0x817   :  { %v743_v18 = vsel %vm742_vm6, %v902_v12, %v721_v13 }
 0x818   :  { %v746_v20 = vsel %vm745_vm7, %v743_v18, %v1389_v5  ;;  %v723_v10 = vpop.permute.xlu0 %722 }
 0x819   :  { %v744_v6 = vsel %vm742_vm6, %v904_v19, %v723_v10  ;;  %v748_v15 = vsel %vm186_vm1, %v746_v20, %v729_v8 }
 0x81a   :  { %v747_v16 = vsel %vm745_vm7, %v744_v6, %v1396_v14  ;;  %v737_v7 = vpop.permute.xlu1 %736 }
 0x81b   :  { %v751_v22 = vsel %vm750_vm8, %v748_v15, %v737_v7  ;;  %v749_v23 = vsel %vm186_vm1, %v747_v16, %v731_v9 }
 0x81c   :  { %v754_v24 = vsel %vm753_vm9, %v751_v22, 0.0  ;;  %v739_v26 = vpop.permute.xlu0 %738 }
 0x81d   :  { %756 = vst [vmem:[#allocation16] sm:$0xff] %v754_v24  ;;  %v752_v28 = vsel %vm750_vm8, %v749_v23, %v739_v26 }
 0x81e   :  { %v755_v5 = vsel %vm753_vm9, %v752_v28, 0.0 }
 0x81f   :  { %757 = vst [vmem:[#allocation16 + $0x8] sm:$0xff] %v755_v5 }
 0x820   :  { %1092 = shalt.err (!%p1089_p12)
}
 0x821   :  { %s1093_s4 = scalar_lea.hbm %s1477_s15, 256 }
 0x822   :  { %p1094_p13 = scmp.ne.s32.totalorder %s1477_s15, %s1093_s4  ;;  %p1097_p0 = scmp.lt.u32.totalorder %s1093_s4, %s1477_s15 }
 0x824   :  { %p1099_p1 = pnand %p1097_p0, %p1094_p13 }
 0x826   :  { %1102 = shalt.err (!%p1099_p1)
}
 0x827   :  { %769 = dma.vmem_to_hbm [thread:$0]  %s764_s26, 256, %s1477_s15, [#allocation4], %s1117_s30, %s1117_s30, %s1118_s16  }
 0x828   :  { %1113 = dma.done.wait [#allocation4], 256  }
 0x829   :  { %1114 = vsyncadd [#allocation4], 4294967040 }
 0x82a   :  { %773 = vsyncpa [#allocation3], 1 }
 0x82b   :  { %774 = vsyncpa [#allocation6], 1 }
 0x82c   :  { %775 = vsyncpa [#allocation9], 1 }
 0x82d   :  { %776 = vsyncpa [#allocation12], 1 }
 0x82e   :  { %777 = vsyncpa [#allocation15], 1 }
 0x82f   :  { %778 = vsyncpa [#allocation4], 1 }

// kernel: tpu_custom_call.1
= control target key start
LH: loop header
LB: loop body
LE: loop exit
PB: predicated region body
PF: predicated region fallthrough
CT: control target
= control target key end

     0   :  { %20 = vsyncpa [#allocation3], 0  ;;  %s1462_s0 = inlined_call_operand.hbm [shape: f32[16,18], index: 0, kind: input, shape index: {}]   ;;  %s1463_s1 = inlined_call_operand.hbm [shape: bf16[18,160], index: 1, kind: input, shape index: {}]   ;;  %s1464_s2 = inlined_call_operand.vmem [shape: f32[1,160], index: 2, kind: input, shape index: {}]   ;;  %s1465_s3 = inlined_call_operand.hbm [shape: bf16[32,32], index: 3, kind: input, shape index: {}]   ;;  %s1466_s4 = inlined_call_operand.hbm [shape: f32[1,32], index: 4, kind: input, shape index: {}]   ;;  %s1467_s5 = inlined_call_operand.vmem [shape: bf16[32,256], index: 5, kind: input, shape index: {}]   ;;  %s1468_s6 = inlined_call_operand.hbm [shape: f32[1,256], index: 6, kind: input, shape index: {}]   ;;  %s1469_s7 = inlined_call_operand.hbm [shape: bf16[4,32], index: 7, kind: input, shape index: {}]   ;;  %s1470_s8 = inlined_call_operand.hbm [shape: f32[1,32], index: 8, kind: input, shape index: {}]   ;;  %s1471_s9 = inlined_call_operand.vmem [shape: bf16[32,32], index: 9, kind: input, shape index: {}]   ;;  %s1472_s10 = inlined_call_operand.vmem [shape: f32[1,32], index: 10, kind: input, shape index: {}]   ;;  %s1473_s11 = inlined_call_operand.hbm [shape: bf16[32,256], index: 11, kind: input, shape index: {}]   ;;  %s1474_s12 = inlined_call_operand.vmem [shape: f32[1,256], index: 12, kind: input, shape index: {}]   ;;  %s1475_s13 = inlined_call_operand.vmem [shape: bf16[32,8], index: 13, kind: input, shape index: {}]   ;;  %s1476_s14 = inlined_call_operand.vmem [shape: f32[1,8], index: 14, kind: input, shape index: {}]   ;;  %s1477_s15 = inlined_call_operand.hbm [shape: f32[16,128], index: 15, kind: output, shape index: {}]  }
   0x1   :  { %21 = vsyncpa [#allocation6], 0 }
   0x2   :  { %22 = vsyncpa [#allocation9], 0 }
   0x3   :  { %23 = vsyncpa [#allocation12], 0 }
   0x4   :  { %24 = vsyncpa [#allocation15], 0 }
   0x5   :  { %25 = vsyncpa [#allocation4], 0  ;;  %s1115_s18 = smov [#allocation5]   ;;  %s1116_s20 = smov [#allocation8]  }
   0x6   :  { %s43_s19 = sshll.u32 %s1115_s18, 4  ;;  %s70_s21 = sshll.u32 %s1116_s20, 4  ;;  %s44_s19 = int_to_ptr.vmem [resolvable:$true] %s43_s19  ;;  %s1215_s21 = int_to_ptr.vmem [resolvable:$true] %s70_s21 }
   0x7   :  { %s905_s24 = scalar_lea.hbm %s1463_s1, 384 }
   0x8   :  { %p906_p0 = scmp.ne.s32.totalorder %s1463_s1, %s905_s24  ;;  %p909_p1 = scmp.lt.u32.totalorder %s905_s24, %s1463_s1 }
   0xa   :  { %p911_p2 = pnand %p909_p1, %p906_p0 }
   0xc   :  { %914 = shalt.err (!%p911_p2)
}
   0xd   :  { %s915_s29 = scalar_lea.vmem %s44_s19, 384  ;;  %p920_p4 = scmp.lt.s32.totalorder %s44_s19, %s44_s19 }
   0xe   :  { %p916_p3 = scmp.ne.s32.totalorder %s44_s19, %s915_s29  ;;  %p921_p5 = scmp.lt.s32.totalorder %s915_s29, %s915_s29 }
  0x10   :  { %p922_p6 = por %p921_p5, %p920_p4 }
  0x12   :  { %p923_p7 = pnand %p922_p6, %p916_p3 }
  0x14   :  { %926 = shalt.err (!%p923_p7)
}
  0x15   :  { %s1117_s30 = smov 128   ;;  %s1118_s16 = smov 8  }
  0x16   :  { %49 = dma.hbm_to_vmem [thread:$0]  %s1463_s1, 384, %s44_s19, [#allocation6], %s1117_s30, %s1117_s30, %s1118_s16  }
  0x17   :  { %s927_s23 = scalar_lea.hbm %s1466_s4, 16 }
  0x18   :  { %p928_p8 = scmp.ne.s32.totalorder %s1466_s4, %s927_s23  ;;  %p931_p9 = scmp.lt.u32.totalorder %s927_s23, %s1466_s4 }
  0x1a   :  { %p933_p10 = pnand %p931_p9, %p928_p8 }
  0x1c   :  { %936 = shalt.err (!%p933_p10)
}
  0x1d   :  { %s937_s28 = scalar_lea.vmem %s1215_s21, 16  ;;  %s941_s1 = scalar_lea.vmem %s1215_s21, 32 }
  0x1e   :  { %p938_p11 = scmp.ne.s32.totalorder %s1215_s21, %s937_s28  ;;  %p942_p12 = scmp.lt.s32.totalorder %s1215_s21, %s1215_s21 }
  0x1f   :  { %p943_p13 = scmp.lt.s32.totalorder %s941_s1, %s937_s28 }
  0x21   :  { %p944_p0 = por %p943_p13, %p942_p12 }
  0x23   :  { %p945_p1 = pnand %p944_p0, %p938_p11 }
  0x25   :  { %948 = shalt.err (!%p945_p1)
}
  0x26   :  { %73 = dma.hbm_to_vmem [thread:$0]  %s1466_s4, 16, %s1215_s21, [#allocation9]  }
  0x27   :  { %s1119_s17 = smov [#allocation11]   ;;  %s1120_s20 = smov [#allocation2]  }
  0x28   :  { %s92_s18 = sshll.u32 %s1119_s17, 4  ;;  %s31_s22 = sshll.u32 %s1120_s20, 4  ;;  %s93_s18 = int_to_ptr.vmem [resolvable:$true] %s92_s18  ;;  %s1250_s22 = int_to_ptr.vmem [resolvable:$true] %s31_s22 }
  0x29   :  { %s949_s25 = scalar_lea.hbm %s1469_s7, 32 }
  0x2a   :  { %p950_p2 = scmp.ne.s32.totalorder %s1469_s7, %s949_s25  ;;  %p953_p3 = scmp.lt.u32.totalorder %s949_s25, %s1469_s7 }
  0x2c   :  { %p955_p4 = pnand %p953_p3, %p950_p2 }
  0x2e   :  { %958 = shalt.err (!%p955_p4)
}
  0x2f   :  { %s959_s4 = scalar_lea.vmem %s93_s18, 32  ;;  %p964_p6 = scmp.lt.s32.totalorder %s93_s18, %s93_s18 }
  0x30   :  { %p960_p5 = scmp.ne.s32.totalorder %s93_s18, %s959_s4  ;;  %p965_p7 = scmp.lt.s32.totalorder %s959_s4, %s959_s4 }
  0x32   :  { %p966_p8 = por %p965_p7, %p964_p6 }
  0x34   :  { %p967_p9 = pnand %p966_p8, %p960_p5 }
  0x36   :  { %970 = shalt.err (!%p967_p9)
}
  0x37   :  { %95 = dma.hbm_to_vmem [thread:$0]  %s1469_s7, 32, %s93_s18, [#allocation12]  }
  0x38   :  { %s971_s20 = scalar_lea.hbm %s1462_s0, 256 }
  0x39   :  { %p972_p10 = scmp.ne.s32.totalorder %s1462_s0, %s971_s20  ;;  %p975_p11 = scmp.lt.u32.totalorder %s971_s20, %s1462_s0 }
  0x3b   :  { %p977_p12 = pnand %p975_p11, %p972_p10 }
  0x3d   :  { %980 = shalt.err (!%p977_p12)
}
  0x3e   :  { %s981_s27 = scalar_lea.vmem %s1250_s22, 256  ;;  %p986_p0 = scmp.lt.s32.totalorder %s1250_s22, %s1250_s22 }
  0x3f   :  { %p982_p13 = scmp.ne.s32.totalorder %s1250_s22, %s981_s27  ;;  %p987_p1 = scmp.lt.s32.totalorder %s981_s27, %s981_s27 }
  0x41   :  { %p988_p2 = por %p987_p1, %p986_p0 }
  0x43   :  { %p989_p3 = pnand %p988_p2, %p982_p13 }
  0x45   :  { %992 = shalt.err (!%p989_p3)
}
  0x46   :  { %37 = dma.hbm_to_vmem [thread:$0]  %s1462_s0, 256, %s1250_s22, [#allocation3], %s1117_s30, %s1117_s30, %s1118_s16  }
  0x47   :  { %s1121_s28 = smov [#allocation7]   ;;  %s993_s19 = scalar_lea.hbm %s1465_s3, 256 }
  0x48   :  { %s57_s1 = sshll.u32 %s1121_s28, 4  ;;  %p994_p4 = scmp.ne.s32.totalorder %s1465_s3, %s993_s19  ;;  %s58_s1 = int_to_ptr.vmem [resolvable:$true] %s57_s1 }
  0x49   :  { %p997_p5 = scmp.lt.u32.totalorder %s993_s19, %s1465_s3 }
  0x4b   :  { %p999_p6 = pnand %p997_p5, %p994_p4 }
  0x4d   :  { %1002 = shalt.err (!%p999_p6)
}
  0x4e   :  { %s1003_s24 = scalar_lea.vmem %s58_s1, 256  ;;  %p1008_p8 = scmp.lt.s32.totalorder %s58_s1, %s58_s1 }
  0x4f   :  { %p1004_p7 = scmp.ne.s32.totalorder %s58_s1, %s1003_s24  ;;  %p1009_p9 = scmp.lt.s32.totalorder %s1003_s24, %s1003_s24 }
  0x51   :  { %p1010_p10 = por %p1009_p9, %p1008_p8 }
  0x53   :  { %p1011_p11 = pnand %p1010_p10, %p1004_p7 }
  0x55   :  { %1014 = shalt.err (!%p1011_p11)
}
  0x56   :  { %s1122_s0 = smov 64   ;;  %s1123_s22 = smov 4  }
  0x57   :  { %63 = dma.hbm_to_vmem [thread:$0]  %s1465_s3, 256, %s58_s1, [#allocation6], %s1122_s0, %s1122_s0, %s1123_s22  }
  0x58   :  { %s1124_s27 = smov [#allocation10]   ;;  %s1125_s18 = smov [#allocation13]  }
  0x59   :  { %s82_s7 = sshll.u32 %s1124_s27, 4  ;;  %s102_s28 = sshll.u32 %s1125_s18, 4  ;;  %s83_s7 = int_to_ptr.vmem [resolvable:$true] %s82_s7  ;;  %s103_s28 = int_to_ptr.vmem [resolvable:$true] %s102_s28 }
  0x5a   :  { %s1015_s19 = scalar_lea.hbm %s1468_s6, 32 }
  0x5b   :  { %p1016_p12 = scmp.ne.s32.totalorder %s1468_s6, %s1015_s19  ;;  %p1019_p13 = scmp.lt.u32.totalorder %s1015_s19, %s1468_s6 }
  0x5d   :  { %p1021_p0 = pnand %p1019_p13, %p1016_p12 }
  0x5f   :  { %1024 = shalt.err (!%p1021_p0)
}
  0x60   :  { %s1025_s3 = scalar_lea.vmem %s83_s7, 32  ;;  %p1030_p2 = scmp.lt.s32.totalorder %s83_s7, %s83_s7 }
  0x61   :  { %p1026_p1 = scmp.ne.s32.totalorder %s83_s7, %s1025_s3  ;;  %p1031_p3 = scmp.lt.s32.totalorder %s1025_s3, %s1025_s3 }
  0x63   :  { %p1032_p4 = por %p1031_p3, %p1030_p2 }
  0x65   :  { %p1033_p5 = pnand %p1032_p4, %p1026_p1 }
  0x67   :  { %1036 = shalt.err (!%p1033_p5)
}
  0x68   :  { %85 = dma.hbm_to_vmem [thread:$0]  %s1468_s6, 32, %s83_s7, [#allocation9]  }
  0x69   :  { %s1037_s25 = scalar_lea.hbm %s1470_s8, 16 }
  0x6a   :  { %p1038_p6 = scmp.ne.s32.totalorder %s1470_s8, %s1037_s25  ;;  %p1041_p7 = scmp.lt.u32.totalorder %s1037_s25, %s1470_s8 }
  0x6c   :  { %p1043_p8 = pnand %p1041_p7, %p1038_p6 }
  0x6e   :  { %1046 = shalt.err (!%p1043_p8)
}
  0x6f   :  { %s1047_s21 = scalar_lea.vmem %s103_s28, 16  ;;  %s1051_s19 = scalar_lea.vmem %s103_s28, 32 }
  0x70   :  { %p1048_p9 = scmp.ne.s32.totalorder %s103_s28, %s1047_s21  ;;  %p1052_p10 = scmp.lt.s32.totalorder %s103_s28, %s103_s28 }
  0x71   :  { %p1053_p11 = scmp.lt.s32.totalorder %s1051_s19, %s1047_s21 }
  0x73   :  { %p1054_p12 = por %p1053_p11, %p1052_p10 }
  0x75   :  { %p1055_p13 = pnand %p1054_p12, %p1048_p9 }
  0x77   :  { %1058 = shalt.err (!%p1055_p13)
}
  0x78   :  { %105 = dma.hbm_to_vmem [thread:$0]  %s1470_s8, 16, %s103_s28, [#allocation12]  }
  0x79   :  { %s1126_s29 = smov [#allocation14]   ;;  %s1059_s3 = scalar_lea.hbm %s1473_s11, 512 }
  0x7a   :  { %s115_s17 = sshll.u32 %s1126_s29, 4  ;;  %p1060_p0 = scmp.ne.s32.totalorder %s1473_s11, %s1059_s3  ;;  %s116_s17 = int_to_ptr.vmem [resolvable:$true] %s115_s17 }
  0x7b   :  { %p1063_p1 = scmp.lt.u32.totalorder %s1059_s3, %s1473_s11 }
  0x7d   :  { %p1065_p2 = pnand %p1063_p1, %p1060_p0 }
  0x7f   :  { %1068 = shalt.err (!%p1065_p2)
}
  0x80   :  { %s1069_s25 = scalar_lea.vmem %s116_s17, 512  ;;  %p1074_p4 = scmp.lt.s32.totalorder %s116_s17, %s116_s17 }
  0x81   :  { %p1070_p3 = scmp.ne.s32.totalorder %s116_s17, %s1069_s25  ;;  %p1075_p5 = scmp.lt.s32.totalorder %s1069_s25, %s1069_s25 }
  0x83   :  { %p1076_p6 = por %p1075_p5, %p1074_p4 }
  0x85   :  { %p1077_p7 = pnand %p1076_p6, %p1070_p3 }
  0x87   :  { %1080 = shalt.err (!%p1077_p7)
}
  0x88   :  { %121 = dma.hbm_to_vmem [thread:$0]  %s1473_s11, 512, %s116_s17, [#allocation15], %s1117_s30, %s1117_s30, %s1118_s16  }
  0x89   :  { %1103 = dma.done.wait [#allocation3], 256  }
  0x8a   :  { %1104 = vsyncadd [#allocation3], 4294967040 }
  0x8b   :  { %1105 = dma.done.wait [#allocation6], 640  }
  0x8c   :  { %1106 = vsyncadd [#allocation6], 4294966656 }
  0x8d   :  { %1107 = dma.done.wait [#allocation9], 48  }
  0x8e   :  { %1108 = vsyncadd [#allocation9], 4294967248 }
  0x8f   :  { %1109 = dma.done.wait [#allocation12], 48  }
  0x90   :  { %1110 = vsyncadd [#allocation12], 4294967248 }
  0x91   :  { %1111 = dma.done.wait [#allocation15], 512  }
  0x92   :  { %1112 = vsyncadd [#allocation15], 4294966784  ;;  %v1127_v0 = vmov 0   ;;  %v870_v1 = vld [vmem:[#allocation5 + $0x4] ss:$8 sps:$4 sm:$0xff]   ;;  %vm190_vm0 = vcmask 1040384   ;;  %v161_v13 = vlaneseq }
  0x93   :  { %229 = vmatprep.mubr.bf16.mxu0 %v1127_v0  ;;  %v872_v2 = vld [vmem:[#allocation5] ss:$8 sps:$4 sm:$0xff]   ;;  %v158_v3 = vld [vmem:[#allocation5 + $0x10] sm:$0x11]  ;;  %197 = vmatprep.subr.bf16.mxu0 %v870_v1  ;;  %v1338_v7 = vld [vmem:[#allocation2 + $0x8] sm:$0xff]  ;;  %vm186_vm1 = vcmask 146432  }
  0x94   :  { %v782_v4 = vcombine.high %v158_v3, %v158_v3  ;;  %v781_v5 = vcombine.low %v158_v3, %v158_v3  ;;  %v1336_v6 = vld [vmem:[#allocation2] sm:$0xff]  ;;  %198 = vmatpush1.bf16.msra.mxu0 %v872_v2  ;;  %v875_v10 = vld [vmem:[#allocation7] sm:$0xff]   ;;  %v1128_v11 = vmov 0.0   ;;  %v876_v12 = vld [vmem:[#allocation7 + $0x8] sm:$0xff]   ;;  %vm1129_vm2 = vmmov 0   ;;  %s1131_s29 = smov 18  }
  0x95   :  { %v155_v9 = vpack.c.bf16 %v1338_v7, %v1336_v6  ;;  %820 = vmatprep.subr.bf16.mxu1 %v1128_v11  ;;  %824 = vmatprep.mubr.msk.bf16.mxu1 %vm1129_vm2, %v1128_v11  ;;  %v162_v14 = vshrl.u32 %v161_v13, 7  ;;  %v159_v16 = vld [vmem:[%s1464_s2] sm:$0x3]  ;;  %vm270_vm3 = vcmask 261120   ;;  %v879_v35 = vld [vmem:[%s1467_s5 + $0x4] ss:$8 sps:$4 sm:$0xff]  }
  0x96   :  { %783 = vmatprep.subr.msk.bf16.mxu0 %vm190_vm0, %v782_v4  ;;  %v192_v8 = vsel %vm190_vm0, %v781_v5, 0  ;;  %821 = vmatpush3.bf16.msra.mxu1 %v875_v10  ;;  %v877_v36 = vld [vmem:[%s1467_s5] ss:$8 sps:$4 sm:$0xff]   ;;  %v882_v37 = vld [vmem:[%s1467_s5 + $0x14] ss:$8 sps:$4 sm:$0xff]   ;;  %vm444_vm4 = vcmask 1041408  }
  0x97   :  { %822 = vmatprep.subr.bf16.mxu1 %v1128_v11  ;;  %v1349_v15 = vsub.s32 0, %v162_v14  ;;  %v1354_v17 = vsub.s32 1, %v162_v14  ;;  %v880_v38 = vld [vmem:[%s1467_s5 + $0x10] ss:$8 sps:$4 sm:$0xff]   ;;  %s1130_s5 = smov 14   ;;  %s1132_s17 = smov 114  }
  0x98   :  { %200 = vmatpush1.bf16.msra.mxu0 %v192_v8  ;;  %v785_v39 = vld [vmem:[#allocation8] ss:$0 sm:$0xff]  ;;  %v322_v49 = vld [vmem:[#allocation10] sm:$0x3]  ;;  %v429_v3 = vld [vmem:[#allocation11] sm:$0x3] }
  0x99   :  { %v164_v18 = vrot.slane %v159_v16, %v1349_v15  ;;  %v168_v19 = vrot.slane %v159_v16, %v1354_v17  ;;  %357 = vmatprep.subr.bf16.mxu0 %v879_v35  ;;  %v327_v50 = vrot.slane %v322_v49, %v1349_v15  ;;  %v331_v51 = vrot.slane %v322_v49, %v1354_v17  ;;  %v568_v49 = vld [vmem:[%s1474_s12] sm:$0x3]  ;;  %s1133_s12 = smov 6  }
  0x9a   :  { %823 = vmatpush3.bf16.msra.mxu1 %v876_v12  ;;  %v446_v4 = vsel %vm444_vm4, %v429_v3, 0  ;;  %vm440_vm5 = vcmask 31744   ;;  %vm742_vm6 = vcmask 48128   ;;  %vm745_vm7 = vcmask 113664  }
  0x9b   :  { %784 = vmatmul.mubr.msk.bf16.vlgmr.msra.gmra.mrb[0].mxu0 %vm186_vm1, %v155_v9  ;;  %828 = vmatprep.subr.bf16.mxu1 %v1128_v11  ;;  %vm750_vm8 = vcmask 179200   ;;  %vm753_vm9 = vcmask 211968  }
  0x9c   :  { %389 = vmatprep.mubr.bf16.mxu0 %v1127_v0  ;;  %358 = vmatpush1.bf16.msra.mxu0 %v877_v36 }
  0x9d   :  { %359 = vmatprep.subr.bf16.mxu0 %v882_v37  ;;  %v887_v37 = vld [vmem:[#allocation14 + $0x4] ss:$8 sps:$4 sm:$0xff]  }
  0xa0   :  { %360 = vmatpush1.bf16.msra.mxu0 %v880_v38  ;;  %v885_v38 = vld [vmem:[#allocation14] ss:$8 sps:$4 sm:$0xff]  }
  0xa1   :  { %834 = vmatprep.subr.bf16.mxu0 %v1128_v11 }
 0x16e   :  { %v231_v20 = vpop.f32.mrb[0].mxu0 }
 0x16f   :  { %v1358_v21 = vadd.f32 %v231_v20, %v164_v18  ;;  %v233_v22 = vpop.f32.mrb[1].mxu0 }
 0x170   :  { %v234_v23 = vadd.f32 %v233_v22, %v168_v19  ;;  %v235_v24 = vpop.f32.mrb[2].mxu0  ;;  %v884_v22 = vld [vmem:[%s1471_s9 + $0x8] sm:$0xff]  }
 0x171   :  { %v1360_v25 = vadd.f32 %v235_v24, %v164_v18  ;;  %v237_v26 = vpop.f32.mrb[3].mxu0  ;;  %v240_v27 = vmax.f32 %v1358_v21, 0.0  ;;  %v796_v21 = vld [vmem:[%s1472_s10] ss:$0 sm:$0xff] }
 0x172   :  { %v241_v28 = vmax.f32 %v234_v23, 0.0  ;;  %v238_v29 = vadd.f32 %v237_v26, %v168_v19  ;;  %v794_v23 = vld [vmem:[#allocation13] ss:$0 sm:$0xff] }
 0x173   :  { %v242_v30 = vmax.f32 %v1360_v25, 0.0 }
 0x174   :  { %v243_v31 = vmax.f32 %v238_v29, 0.0  ;;  %v244_v32 = vmul.f32 %v241_v28, %v240_v27 }
 0x176   :  { %v245_v33 = vmul.f32 %v243_v31, %v242_v30 }
 0x178   :  { %v246_v34 = vpack.c.bf16 %v245_v33, %v244_v32 }
 0x17a   :  { %825 = vmatmul.mubr.msk.bf16.vlgmr.msra.gmra.mrb[0].mxu1 %vm270_vm3, %v246_v34 }
 0x17b   :  { %830 = vmatprep.mubr.msk.bf16.mxu1 %vm1129_vm2, %v1128_v11  ;;  %829 = vmatpush3.bf16.msra.mxu1 %v446_v4 }
 0x17c   :  { %603 = vmatprep.subr.bf16.mxu1 %v887_v37 }
 0x24d   :  { %v308_v40 = vpop.f32.mrb[0].mxu1 }
 0x24e   :  { %v309_v41 = vadd.f32 %v785_v39, %v308_v40  ;;  %v826_v42 = vpop.f32.mrb[1].mxu1  ;;  %v888_v40 = vld [vmem:[#allocation14 + $0x10] ss:$8 sps:$4 sm:$0xff]  }
 0x24f   :  { %v311_v43 = vpop.f32.mrb[2].mxu1 }
 0x250   :  { %v312_v44 = vadd.f32 %v785_v39, %v311_v43  ;;  %v827_v45 = vpop.f32.mrb[3].mxu1  ;;  %v315_v46 = vmax.f32 %v309_v41, 0.0  ;;  %v890_v39 = vld [vmem:[#allocation14 + $0x14] ss:$8 sps:$4 sm:$0xff]  }
 0x252   :  { %v316_v47 = vmax.f32 %v312_v44, 0.0 }
 0x254   :  { %v317_v48 = vpack.c.bf16 %v316_v47, %v315_v46  ;;  %v891_v47 = vld [vmem:[%s1475_s13] sm:$0xff]  }
 0x256   :  { %793 = vmatmul.mubr.msk.bf16.vlgmr.msra.gmra.mrb[4].mxu0 %vm270_vm3, %v317_v48  ;;  %v892_v48 = vld [vmem:[%s1475_s13 + $0x8] sm:$0xff]  }
 0x257   :  { %838 = vmatprep.mubr.msk.bf16.mxu0 %vm1129_vm2, %v1128_v11 }
 0x329   :  { %v391_v52 = vpop.f32.mrb[4].mxu0 }
 0x32a   :  { %v392_v53 = vadd.f32 %v391_v52, %v327_v50  ;;  %v393_v54 = vpop.f32.mrb[5].mxu0 }
 0x32b   :  { %v394_v55 = vadd.f32 %v393_v54, %v331_v51  ;;  %v395_v56 = vpop.f32.mrb[6].mxu0 }
 0x32c   :  { %v397_v57 = vpop.f32.mrb[7].mxu0  ;;  %418 = vrot.lane.b32.xlu1 %v392_v53, %s1130_s5  ;;  %v396_v60 = vadd.f32 %v395_v56, %v327_v50  ;;  %v577_v50 = vrot.slane %v568_v49, %v1354_v17 }
 0x32d   :  { %v400_v58 = vmul.f32 0.5, %v394_v55  ;;  %v398_v59 = vadd.f32 %v397_v57, %v331_v51 }
 0x32f   :  { %v402_v61 = vmul.f32 1.442695, %v400_v58  ;;  %v401_v62 = vmul.f32 0.5, %v398_v59 }
 0x330   :  { %420 = vrot.lane.b32.xlu1 %v396_v60, %s1130_s5 }
 0x331   :  { %893 = vpow2.f32 %v402_v61  ;;  %v404_v63 = vmul.f32 1.442695, %v401_v62 }
 0x333   :  { %895 = vpow2.f32 %v404_v63 }
 0x334   :  { %728 = vrot.lane.b32.xlu1 %v394_v55, %s1131_s29 }
 0x33b   :  { %v894_v1 = vpop.eup %893 }
 0x33c   :  { %408 = vrot.lane.b32.xlu0 %v894_v1, %s1130_s5 }
 0x33d   :  { %v896_v2 = vpop.eup %895 }
 0x340   :  { %410 = vrot.lane.b32.xlu0 %v896_v2, %s1130_s5  ;;  %v573_v2 = vrot.slane %v568_v49, %v1349_v15 }
 0x39e   :  { %v1389_v5 = vpop.permute.xlu1 %418 }
 0x3a2   :  { %v1396_v14 = vpop.permute.xlu1 %420 }
 0x3ae   :  { %v409_v8 = vpop.permute.xlu0 %408 }
 0x3af   :  { %v414_v9 = vmul.f32 %v409_v8, %v1336_v6  ;;  %v729_v8 = vpop.permute.xlu1 %728 }
 0x3b1   :  { %v1393_v10 = vadd.f32 %v1389_v5, %v414_v9 }
 0x3b2   :  { %v411_v12 = vpop.permute.xlu0 %410 }
 0x3b3   :  { %v415_v13 = vmul.f32 %v411_v12, %v1338_v7  ;;  %897 = vtanh.f32 %v1393_v10  ;;  %v883_v7 = vld [vmem:[%s1471_s9] sm:$0xff]  }
 0x3b4   :  { %835 = vmatpush3.bf16.msra.mxu0 %v883_v7 }
 0x3b5   :  { %v1399_v16 = vadd.f32 %v1396_v14, %v415_v13  ;;  %836 = vmatprep.subr.bf16.mxu0 %v1128_v11 }
 0x3b7   :  { %899 = vtanh.f32 %v1399_v16 }
 0x3b8   :  { %837 = vmatpush3.bf16.msra.mxu0 %v884_v22 }
 0x3b9   :  { %842 = vmatprep.subr.bf16.mxu0 %v1128_v11 }
 0x3bd   :  { %v898_v18 = vpop.eup %897 }
 0x3c1   :  { %v900_v19 = vpop.eup %899 }
 0x3c2   :  { %v428_v20 = vpack.c.bf16 %v900_v19, %v898_v18 }
 0x3c4   :  { %438 = vrot.lane.b32.xlu0 %v428_v20, %s1132_s17 }
 0x3c8   :  { %730 = vrot.lane.b32.xlu0 %v398_v59, %s1131_s29  ;;  %v805_v59 = vld [vmem:[%s1476_s14] ss:$0 sm:$0xff]  ;;  %s1134_s14 = smov [#allocation16]  }
 0x3c9   :  { %s763_s26 = sshll.u32 %s1134_s14, 4  ;;  %s764_s26 = int_to_ptr.vmem [resolvable:$true] %s763_s26 }
 0x3ca   :  { %s1081_s2 = scalar_lea.vmem %s764_s26, 256  ;;  %p1086_p9 = scmp.lt.s32.totalorder %s764_s26, %s764_s26 }
 0x3cb   :  { %p1082_p8 = scmp.ne.s32.totalorder %s764_s26, %s1081_s2  ;;  %p1087_p10 = scmp.lt.s32.totalorder %s1081_s2, %s1081_s2 }
 0x3cd   :  { %p1088_p11 = por %p1087_p10, %p1086_p9 }
 0x3cf   :  { %p1089_p12 = pnand %p1088_p11, %p1082_p8 }
 0x436   :  { %v439_v6 = vpop.permute.xlu0 %438 }
 0x437   :  { %831 = vmatmul.mubr.msk.bf16.vlgmr.msra.gmra.mrb[4].mxu1 %vm440_vm5, %v439_v6 }
 0x438   :  { %635 = vmatprep.mubr.bf16.mxu1 %v1127_v0  ;;  %604 = vmatpush1.bf16.msra.mxu1 %v885_v38 }
 0x439   :  { %605 = vmatprep.subr.bf16.mxu1 %v890_v39 }
 0x43a   :  { %v731_v9 = vpop.permute.xlu0 %730 }
 0x43c   :  { %606 = vmatpush1.bf16.msra.mxu1 %v888_v40 }
 0x50a   :  { %v482_v24 = vpop.f32.mrb[4].mxu1 }
 0x50b   :  { %v483_v26 = vadd.f32 %v794_v23, %v482_v24  ;;  %v832_v28 = vpop.f32.mrb[5].mxu1 }
 0x50c   :  { %v485_v29 = vpop.f32.mrb[6].mxu1 }
 0x50d   :  { %v489_v0 = vmax.f32 %v483_v26, 0.0  ;;  %v486_v31 = vadd.f32 %v794_v23, %v485_v29  ;;  %v833_v32 = vpop.f32.mrb[7].mxu1 }
 0x50f   :  { %v490_v33 = vmax.f32 %v486_v31, 0.0  ;;  %v491_v34 = vmul.f32 %v489_v0, %v240_v27 }
 0x511   :  { %v492_v35 = vmul.f32 %v490_v33, %v242_v30 }
 0x513   :  { %v493_v36 = vpack.c.bf16 %v492_v35, %v491_v34 }
 0x515   :  { %839 = vmatmul.mubr.msk.bf16.vlgmr.msra.gmra.mrb[8].mxu0 %vm270_vm3, %v493_v36 }
 0x516   :  { %846 = vmatprep.mubr.msk.bf16.mxu0 %vm1129_vm2, %v1128_v11  ;;  %843 = vmatpush3.bf16.msra.mxu0 %v891_v47 }
 0x517   :  { %844 = vmatprep.subr.bf16.mxu0 %v1128_v11 }
 0x51a   :  { %845 = vmatpush3.bf16.msra.mxu0 %v892_v48 }
 0x5e8   :  { %v554_v25 = vpop.f32.mrb[8].mxu0 }
 0x5e9   :  { %v555_v27 = vadd.f32 %v796_v21, %v554_v25  ;;  %v840_v30 = vpop.f32.mrb[9].mxu0 }
 0x5ea   :  { %v557_v41 = vpop.f32.mrb[10].mxu0 }
 0x5eb   :  { %v558_v42 = vadd.f32 %v796_v21, %v557_v41  ;;  %v841_v43 = vpop.f32.mrb[11].mxu0  ;;  %v561_v44 = vmax.f32 %v555_v27, 0.0 }
 0x5ed   :  { %v562_v45 = vmax.f32 %v558_v42, 0.0 }
 0x5ef   :  { %v563_v46 = vpack.c.bf16 %v562_v45, %v561_v44 }
 0x5f1   :  { %804 = vmatmul.mubr.msk.bf16.vlgmr.msra.gmra.mrb[8].mxu1 %vm270_vm3, %v563_v46 }
 0x6c4   :  { %v637_v51 = vpop.f32.mrb[8].mxu1 }
 0x6c5   :  { %v639_v52 = vpop.f32.mrb[9].mxu1  ;;  %v638_v3 = vadd.f32 %v637_v51, %v573_v2 }
 0x6c6   :  { %v640_v53 = vadd.f32 %v639_v52, %v577_v50  ;;  %v641_v54 = vpop.f32.mrb[10].mxu1 }
 0x6c7   :  { %v643_v55 = vpop.f32.mrb[11].mxu1  ;;  %v642_v4 = vadd.f32 %v641_v54, %v573_v2  ;;  %901 = vtanh.f32 %v638_v3 }
 0x6c8   :  { %v644_v56 = vadd.f32 %v643_v55, %v577_v50  ;;  %v648_v57 = vmax.f32 %v640_v53, 0.0 }
 0x6c9   :  { %903 = vtanh.f32 %v642_v4 }
 0x6ca   :  { %v649_v58 = vmax.f32 %v644_v56, 0.0 }
 0x6cc   :  { %v650_v11 = vpack.c.bf16 %v649_v58, %v648_v57 }
 0x6ce   :  { %847 = vmatmul.mubr.msk.bf16.vlgmr.msra.gmra.mrb[12].mxu0 %vm270_vm3, %v650_v11 }
 0x6d1   :  { %v902_v12 = vpop.eup %901 }
 0x6d3   :  { %v904_v19 = vpop.eup %903 }
 0x7a1   :  { %v711_v60 = vpop.f32.mrb[12].mxu0 }
 0x7a2   :  { %v712_v61 = vadd.f32 %v805_v59, %v711_v60  ;;  %v848_v62 = vpop.f32.mrb[13].mxu0 }
 0x7a3   :  { %v714_v63 = vpop.f32.mrb[14].mxu0 }
 0x7a4   :  { %v715_v17 = vadd.f32 %v805_v59, %v714_v63  ;;  %720 = vrot.lane.b32.xlu1 %v712_v61, %s1133_s12  ;;  %v849_v1 = vpop.f32.mrb[15].mxu0 }
 0x7a6   :  { %722 = vrot.lane.b32.xlu0 %v715_v17, %s1133_s12 }
 0x7a8   :  { %736 = vrot.lane.b32.xlu1 %v1393_v10, %s1118_s16 }
 0x7aa   :  { %738 = vrot.lane.b32.xlu0 %v1399_v16, %s1118_s16 }
 0x816   :  { %v721_v13 = vpop.permute.xlu1 %720 }
 0x817   :  { %v743_v18 = vsel %vm742_vm6, %v902_v12, %v721_v13 }
 0x818   :  { %v746_v20 = vsel %vm745_vm7, %v743_v18, %v1389_v5  ;;  %v723_v10 = vpop.permute.xlu0 %722 }
 0x819   :  { %v744_v6 = vsel %vm742_vm6, %v904_v19, %v723_v10  ;;  %v748_v15 = vsel %vm186_vm1, %v746_v20, %v729_v8 }
 0x81a   :  { %v747_v16 = vsel %vm745_vm7, %v744_v6, %v1396_v14  ;;  %v737_v7 = vpop.permute.xlu1 %736 }
 0x81b   :  { %v751_v22 = vsel %vm750_vm8, %v748_v15, %v737_v7  ;;  %v749_v23 = vsel %vm186_vm1, %v747_v16, %v731_v9 }
 0x81c   :  { %v754_v24 = vsel %vm753_vm9, %v751_v22, 0.0  ;;  %v739_v26 = vpop.permute.xlu0 %738 }
 0x81d   :  { %756 = vst [vmem:[#allocation16] sm:$0xff] %v754_v24  ;;  %v752_v28 = vsel %vm750_vm8, %v749_v23, %v739_v26 }
 0x81e   :  { %v755_v5 = vsel %vm753_vm9, %v752_v28, 0.0 }
 0x81f   :  { %757 = vst [vmem:[#allocation16 + $0x8] sm:$0xff] %v755_v5 }
 0x820   :  { %1092 = shalt.err (!%p1089_p12)
}
 0x821   :  { %s1093_s4 = scalar_lea.hbm %s1477_s15, 256 }
 0x822   :  { %p1094_p13 = scmp.ne.s32.totalorder %s1477_s15, %s1093_s4  ;;  %p1097_p0 = scmp.lt.u32.totalorder %s1093_s4, %s1477_s15 }
 0x824   :  { %p1099_p1 = pnand %p1097_p0, %p1094_p13 }
 0x826   :  { %1102 = shalt.err (!%p1099_p1)
}
 0x827   :  { %769 = dma.vmem_to_hbm [thread:$0]  %s764_s26, 256, %s1477_s15, [#allocation4], %s1117_s30, %s1117_s30, %s1118_s16  }
 0x828   :  { %1113 = dma.done.wait [#allocation4], 256  }
 0x829   :  { %1114 = vsyncadd [#allocation4], 4294967040 }
 0x82a   :  { %773 = vsyncpa [#allocation3], 1 }
 0x82b   :  { %774 = vsyncpa [#allocation6], 1 }
 0x82c   :  { %775 = vsyncpa [#allocation9], 1 }
 0x82d   :  { %776 = vsyncpa [#allocation12], 1 }
 0x82e   :  { %777 = vsyncpa [#allocation15], 1 }
 0x82f   :  { %778 = vsyncpa [#allocation4], 1 }

</bundles_post_ra>
